<compile_context>
chip_gen: v7x
topology: tpu7x:2x2x1
jax: 0.10.0
libtpu: 0.0.40
codegen_flags: <defaults>
</compile_context>

<pallas_src>
import functools

import jax
import jax.numpy as jnp
from jax.experimental import pallas as pl
from jax.experimental.pallas import tpu as pltpu


# ----------------------------- config -----------------------------
BATCH = 8
INPUT_SIZE = 16        # per-timestep feature size of inp3D
FFNN_INPUT = 32        # feature size of inp2D
HIDDEN_SIZE = 32       # MLP encoder hidden size
NUM_LAYERS = 2         # MLP encoder depth
SEQ_LENGTH = 4         # number of timesteps / encoders
ENC_OUT = 64           # per-encoder output size (hard-coded 64 in the module)
FFNN_OUT = 256         # ffnn branch output size (hard-coded 256 in the module)


def _relu(x):
    return jnp.maximum(x, 0.0)


# ----------------------------- kernel -----------------------------
def amex_kernel(
    # activations
    x3f_ref, x2_ref,
    # block-diagonal encoder bank (bf16 weights, f32 biases)
    ew0_ref, eb0_ref, ewh_ref, ebh_ref, ewo_ref, ebo_ref,
    # ffnn branch (fw1 VMEM; fw2/fw3 streamed manually)
    fw1_ref, fb1_ref, fb2_ref, fb3_ref,
    # classifier small pieces (cw1_enc/cw1_ffn/cw2 streamed manually)
    cw1l_ref, cb1_ref, cb2_ref, cw3_ref, cb3_ref,
    # big late-stage weights, raw HBM refs
    fw2_hbm, fw3_hbm, cw1e_hbm, cw1f_hbm, cw2_hbm,
    # output
    out_ref,
    # scratch
    fw2_v, fw3_v, cw1e_v, cw1f_v, cw2_v, dsem,
    *, num_layers,
):
    f32, bf16 = jnp.float32, jnp.bfloat16

    # --- kick off DMAs for the big late-stage weights so they land while the
    # encoder bank / fw1 layer compute (manual double-buffer-style overlap;
    # grid is (1,) for any batch <= 256, so these are issued once per call).
    cp_fw2 = pltpu.make_async_copy(fw2_hbm, fw2_v, dsem.at[0]); cp_fw2.start()
    cp_fw3 = pltpu.make_async_copy(fw3_hbm, fw3_v, dsem.at[1]); cp_fw3.start()
    cp_c1e = pltpu.make_async_copy(cw1e_hbm, cw1e_v, dsem.at[2]); cp_c1e.start()
    cp_c1f = pltpu.make_async_copy(cw1f_hbm, cw1f_v, dsem.at[3]); cp_c1f.start()
    cp_cw2 = pltpu.make_async_copy(cw2_hbm, cw2_v, dsem.at[4]); cp_cw2.start()

    x3f = x3f_ref[...]                                     # (TM, S*I) f32
    x_last = x3f[:, -INPUT_SIZE:]                          # (TM, I) — no extra DMA

    # ---- encoder bank: block-diagonal MLPs over all timesteps at once
    # TODO(synk): nn.Dropout(0.2)/(0.1) in MLP_MODEL / ffnn / classifier are
    # eval-mode identity here (inference semantics).
    e = _relu(jnp.dot(x3f.astype(bf16), ew0_ref[...],
                      preferred_element_type=f32) + eb0_ref[...])       # (TM, S*H)
    for l in range(num_layers - 1):
        e = _relu(jnp.dot(e.astype(bf16), ewh_ref[l],
                          preferred_element_type=f32) + ebh_ref[l])
    enc = (jnp.dot(e.astype(bf16), ewo_ref[...],
                   preferred_element_type=f32) + ebo_ref[...])          # (TM, 256)

    # ---- ffnn branch (bf16 weights/operands, f32 accumulation & elementwise)
    h = _relu(jnp.dot(x2_ref[...].astype(bf16), fw1_ref[...],
                      preferred_element_type=f32) + fb1_ref[...])
    cp_fw2.wait()
    h = _relu(jnp.dot(h.astype(bf16), fw2_v[...],
                      preferred_element_type=f32) + fb2_ref[...])
    cp_fw3.wait()
    ffn = (jnp.dot(h.astype(bf16), fw3_v[...],
                   preferred_element_type=f32) + fb3_ref[...])          # (TM, 256)

    # ---- classifier layer 1: torch.cat([enc, ffn, x_last]) @ cw1 + cb1,
    # realized as three split-K dots (no lane-axis concat copy).
    cp_c1e.wait(); cp_c1f.wait()
    z1 = (cb1_ref[...]
          + jnp.dot(enc.astype(bf16), cw1e_v[...], preferred_element_type=f32)
          + jnp.dot(ffn.astype(bf16), cw1f_v[...], preferred_element_type=f32)
          + jnp.dot(x_last.astype(bf16), cw1l_ref[...],
                    preferred_element_type=f32))
    z1 = _relu(z1)

    cp_cw2.wait()
    z2 = _relu(jnp.dot(z1.astype(bf16), cw2_v[...],
                       preferred_element_type=f32) + cb2_ref[...])      # (TM, 256)

    # ---- final (256 -> 1) layer: VPU multiply + lane reduction (no padded MXU pass)
    out_ref[...] = (jnp.sum(z2 * cw3_ref[...], axis=-1, keepdims=True)
                    + cb3_ref[...])


# ----------------------------- wrapper -----------------------------
VMEM_WEIGHT_KEYS = (
    "enc_w0_blk", "enc_b0_blk", "enc_wh_blk", "enc_bh_blk",
    "enc_wo_blk", "enc_bo_blk",
    "fw1", "fb1", "fb2", "fb3",
    "cw1_last", "cb1", "cb2", "cw3_row", "cb3",
)
HBM_WEIGHT_KEYS = ("fw2", "fw3", "cw1_enc", "cw1_ffn", "cw2")


def amex_forward(params, inp3D, inp2D):
    B, S, I = inp3D.shape
    F = inp2D.shape[1]
    x3f = inp3D.reshape(B, S * I)          # (B, 64)

    # Batch tile: all weight index_maps are constant, so larger batches amortize
    # the fixed ~1.7 MiB weight read for free. Once B >= 16, split into >= 2
    # blocks so both v7x TensorCores get work ("parallel" batch axis).
    if B >= 16:
        block_m = min(256, ((B + 1) // 2 + 7) // 8 * 8)
    else:
        block_m = B
    grid = (pl.cdiv(B, block_m),)

    def row_spec(cols):
        return pl.BlockSpec((block_m, cols), lambda i: (i, 0))

    def const_spec(shape):
        n = len(shape)
        return pl.BlockSpec(shape, lambda i, _n=n: (0,) * _n)

    vmem_ws = [params[k] for k in VMEM_WEIGHT_KEYS]
    hbm_ws = [params[k] for k in HBM_WEIGHT_KEYS]
    in_specs = ([row_spec(S * I), row_spec(F)]
                + [const_spec(w.shape) for w in vmem_ws]
                + [pl.BlockSpec(memory_space=pl.ANY)] * len(hbm_ws))

    scratch_shapes = ([pltpu.VMEM(params[k].shape, params[k].dtype)
                       for k in HBM_WEIGHT_KEYS]
                      + [pltpu.SemaphoreType.DMA((len(HBM_WEIGHT_KEYS),))])

    kernel = functools.partial(amex_kernel, num_layers=NUM_LAYERS)
    out = pl.pallas_call(
        kernel,
        out_shape=jax.ShapeDtypeStruct((B, 1), jnp.float32),
        grid=grid,
        in_specs=in_specs,
        out_specs=pl.BlockSpec((block_m, 1), lambda i: (i, 0)),
        scratch_shapes=scratch_shapes,
        compiler_params=pltpu.CompilerParams(
            dimension_semantics=("parallel",)),
    )(x3f, inp2D, *vmem_ws, *hbm_ws)
    return out


# ----------------------------- params -----------------------------
def _linear_init(key, fan_in, fan_out):
    k1, k2 = jax.random.split(key)
    bound = 1.0 / jnp.sqrt(jnp.float32(fan_in))
    w = jax.random.uniform(k1, (fan_in, fan_out), jnp.float32, -bound, bound)
    b = jax.random.uniform(k2, (fan_out,), jnp.float32, -bound, bound)
    return w, b


def init_params(key):
    keys = iter(jax.random.split(key, 64))

    # per-timestep MLP encoders (torch layout, f32)
    w0s, b0s, wos, bos = [], [], [], []
    whs = [[] for _ in range(NUM_LAYERS - 1)]
    bhs = [[] for _ in range(NUM_LAYERS - 1)]
    for _ in range(SEQ_LENGTH):
        w, b = _linear_init(next(keys), INPUT_SIZE, HIDDEN_SIZE)
        w0s.append(w); b0s.append(b)
        for l in range(NUM_LAYERS - 1):
            w, b = _linear_init(next(keys), HIDDEN_SIZE, HIDDEN_SIZE)
            whs[l].append(w); bhs[l].append(b)
        w, b = _linear_init(next(keys), HIDDEN_SIZE, ENC_OUT)
        wos.append(w); bos.append(b)

    fw1, fb1 = _linear_init(next(keys), FFNN_INPUT, 512)
    fw2, fb2 = _linear_init(next(keys), 512, 512)
    fw3, fb3 = _linear_init(next(keys), 512, FFNN_OUT)

    cls_in = ENC_OUT * SEQ_LENGTH + FFNN_OUT + INPUT_SIZE
    cw1, cb1 = _linear_init(next(keys), cls_in, 512)
    cw2, cb2 = _linear_init(next(keys), 512, 256)
    cw3, cb3 = _linear_init(next(keys), 256, 1)

    # pure-f32 reference params (exactly the PyTorch module layout)
    ref = dict(
        enc_w0=jnp.stack(w0s), enc_b0=jnp.stack(b0s),
        enc_wh=jnp.stack([jnp.stack(w) for w in whs]),
        enc_bh=jnp.stack([jnp.stack(b) for b in bhs]),
        enc_wo=jnp.stack(wos), enc_bo=jnp.stack(bos),
        fw1=fw1, fb1=fb1, fw2=fw2, fb2=fb2, fw3=fw3, fb3=fb3,
        cw1=cw1, cb1=cb1, cw2=cw2, cb2=cb2, cw3=cw3, cb3=cb3,
    )

    # ---- kernel params: block-diagonal encoder bank (bf16) ----
    S, I, H = SEQ_LENGTH, INPUT_SIZE, HIDDEN_SIZE
    w0_blk = jnp.zeros((S * I, S * H), jnp.float32)
    for s in range(S):
        w0_blk = w0_blk.at[s * I:(s + 1) * I, s * H:(s + 1) * H].set(w0s[s])
    b0_blk = jnp.concatenate(b0s).reshape(1, S * H)

    wh_blk, bh_blk = [], []
    for l in range(NUM_LAYERS - 1):
        wl = jnp.zeros((S * H, S * H), jnp.float32)
        for s in range(S):
            wl = wl.at[s * H:(s + 1) * H, s * H:(s + 1) * H].set(whs[l][s])
        wh_blk.append(wl)
        bh_blk.append(jnp.concatenate(bhs[l]).reshape(1, S * H))

    wo_blk = jnp.zeros((S * H, S * ENC_OUT), jnp.float32)
    for s in range(S):
        wo_blk = wo_blk.at[s * H:(s + 1) * H,
                           s * ENC_OUT:(s + 1) * ENC_OUT].set(wos[s])
    bo_blk = jnp.concatenate(bos).reshape(1, S * ENC_OUT)

    enc_width = S * ENC_OUT                          # 256
    cw1_enc = cw1[:enc_width, :]                     # (256, 512)
    cw1_ffn = cw1[enc_width:enc_width + FFNN_OUT, :] # (256, 512)
    cw1_last = cw1[enc_width + FFNN_OUT:, :]         # (16, 512)

    bf16 = jnp.bfloat16
    kparams = dict(
        enc_w0_blk=w0_blk.astype(bf16), enc_b0_blk=b0_blk,
        enc_wh_blk=jnp.stack(wh_blk).astype(bf16),
        enc_bh_blk=jnp.stack(bh_blk),
        enc_wo_blk=wo_blk.astype(bf16), enc_bo_blk=bo_blk,
        fw1=fw1.astype(bf16), fb1=fb1.reshape(1, -1),
        fw2=fw2.astype(bf16), fb2=fb2.reshape(1, -1),
        fw3=fw3.astype(bf16), fb3=fb3.reshape(1, -1),
        cw1_enc=cw1_enc.astype(bf16), cw1_ffn=cw1_ffn.astype(bf16),
        cw1_last=cw1_last.astype(bf16), cb1=cb1.reshape(1, -1),
        cw2=cw2.astype(bf16), cb2=cb2.reshape(1, -1),
        cw3_row=cw3.reshape(1, -1),                  # (1, 256) f32
        cb3=cb3.reshape(1, 1),                       # (1, 1) f32
    )
    return kparams, ref


# ----------------------------- references -----------------------------
def ref_forward_f32(p, x3, x2):
    """Pure-f32 reference with the exact PyTorch-module structure."""
    enc_parts = []
    for s in range(SEQ_LENGTH):
        h = _relu(x3[:, s, :] @ p["enc_w0"][s] + p["enc_b0"][s])
        for l in range(NUM_LAYERS - 1):
            h = _relu(h @ p["enc_wh"][l, s] + p["enc_bh"][l, s])
        enc_parts.append(h @ p["enc_wo"][s] + p["enc_bo"][s])
    enc = jnp.concatenate(enc_parts, axis=1)                     # (B, 64*S)

    f = _relu(x2 @ p["fw1"] + p["fb1"])
    f = _relu(f @ p["fw2"] + p["fb2"])
    f = f @ p["fw3"] + p["fb3"]                                  # (B, 256)

    cat = jnp.concatenate([enc, f, x3[:, -1, :]], axis=1)
    z = _relu(cat @ p["cw1"] + p["cb1"])
    z = _relu(z @ p["cw2"] + p["cb2"])
    return z @ p["cw3"] + p["cb3"]


def ref_forward_matched(kp, x3, x2):
    """Pure-JAX reference replicating the kernel's exact math/precision."""
    f32, bf16 = jnp.float32, jnp.bfloat16
    B, S, I = x3.shape
    x3f = x3.reshape(B, S * I)
    x_last = x3f[:, -I:]

    e = _relu(jnp.dot(x3f.astype(bf16), kp["enc_w0_blk"],
                      preferred_element_type=f32) + kp["enc_b0_blk"])
    for l in range(NUM_LAYERS - 1):
        e = _relu(jnp.dot(e.astype(bf16), kp["enc_wh_blk"][l],
                          preferred_element_type=f32) + kp["enc_bh_blk"][l])
    enc = (jnp.dot(e.astype(bf16), kp["enc_wo_blk"],
                   preferred_element_type=f32) + kp["enc_bo_blk"])

    h = _relu(jnp.dot(x2.astype(bf16), kp["fw1"],
                      preferred_element_type=f32) + kp["fb1"])
    h = _relu(jnp.dot(h.astype(bf16), kp["fw2"],
                      preferred_element_type=f32) + kp["fb2"])
    ffn = jnp.dot(h.astype(bf16), kp["fw3"],
                  preferred_element_type=f32) + kp["fb3"]

    z1 = (kp["cb1"]
          + jnp.dot(enc.astype(bf16), kp["cw1_enc"], preferred_element_type=f32)
          + jnp.dot(ffn.astype(bf16), kp["cw1_ffn"], preferred_element_type=f32)
          + jnp.dot(x_last.astype(bf16), kp["cw1_last"],
                    preferred_element_type=f32))
    z1 = _relu(z1)
    z2 = _relu(jnp.dot(z1.astype(bf16), kp["cw2"],
                       preferred_element_type=f32) + kp["cb2"])
    return jnp.sum(z2 * kp["cw3_row"], axis=-1, keepdims=True) + kp["cb3"]


# ----------------------------- main -----------------------------
if __name__ == "__main__":
    key = jax.random.PRNGKey(0)
    k_x3, k_x2, k_p = jax.random.split(key, 3)

    inp3D = jax.random.normal(k_x3, (BATCH, SEQ_LENGTH, INPUT_SIZE), jnp.float32)
    inp2D = jax.random.normal(k_x2, (BATCH, FFNN_INPUT), jnp.float32)
    kparams, rparams = init_params(k_p)

    out = jax.block_until_ready(amex_forward(kparams, inp3D, inp2D))
    ref_m = jax.block_until_ready(ref_forward_matched(kparams, inp3D, inp2D))
    ref_f = jax.block_until_ready(ref_forward_f32(rparams, inp3D, inp2D))

    assert out.shape == (BATCH, 1), out.shape
    # tight check vs a reference that uses the same bf16 weights / math
    assert jnp.allclose(out, ref_m, rtol=1e-2, atol=1e-2), (out, ref_m)
    # loose check vs the exact f32 PyTorch-module semantics (bf16 weight +
    # activation quantization error is expected here)
    assert jnp.allclose(out, ref_f, rtol=1e-1, atol=1e-1), (out, ref_f)
    print("KERNEL_OK")
</pallas_src>

<mosaic_0001>
module attributes {stable_mosaic.version = 11 : i64} {
  func.func @amex_kernel(%arg0: i32, %arg1: memref<8x64xf32, #tpu.memory_space<vmem>>, %arg2: memref<8x32xf32, #tpu.memory_space<vmem>>, %arg3: memref<64x128xbf16, #tpu.memory_space<vmem>>, %arg4: memref<1x128xf32, #tpu.memory_space<vmem>>, %arg5: memref<1x128x128xbf16, #tpu.memory_space<vmem>>, %arg6: memref<1x1x128xf32, #tpu.memory_space<vmem>>, %arg7: memref<128x256xbf16, #tpu.memory_space<vmem>>, %arg8: memref<1x256xf32, #tpu.memory_space<vmem>>, %arg9: memref<32x512xbf16, #tpu.memory_space<vmem>>, %arg10: memref<1x512xf32, #tpu.memory_space<vmem>>, %arg11: memref<1x512xf32, #tpu.memory_space<vmem>>, %arg12: memref<1x256xf32, #tpu.memory_space<vmem>>, %arg13: memref<16x512xbf16, #tpu.memory_space<vmem>>, %arg14: memref<1x512xf32, #tpu.memory_space<vmem>>, %arg15: memref<1x256xf32, #tpu.memory_space<vmem>>, %arg16: memref<1x256xf32, #tpu.memory_space<vmem>>, %arg17: memref<1x1xf32, #tpu.memory_space<vmem>>, %arg18: memref<512x512xbf16, #tpu.memory_space<any>>, %arg19: memref<512x256xbf16, #tpu.memory_space<any>>, %arg20: memref<256x512xbf16, #tpu.memory_space<any>>, %arg21: memref<256x512xbf16, #tpu.memory_space<any>>, %arg22: memref<512x256xbf16, #tpu.memory_space<any>>, %arg23: memref<8x1xf32, #tpu.memory_space<vmem>>, %arg24: memref<512x512xbf16, #tpu.memory_space<vmem>>, %arg25: memref<512x256xbf16, #tpu.memory_space<vmem>>, %arg26: memref<256x512xbf16, #tpu.memory_space<vmem>>, %arg27: memref<256x512xbf16, #tpu.memory_space<vmem>>, %arg28: memref<512x256xbf16, #tpu.memory_space<vmem>>, %arg29: memref<5x!tpu.dma_semaphore, #tpu.memory_space<semaphore_mem>>) attributes {dimension_semantics = [#tpu.dimension_semantics<parallel>], iteration_bounds = array<i64: 1>, scalar_prefetch = 0 : i64, scratch_operands = 6 : i64, tpu.core_type = #tpu.core_type<tc>, window_params = [{transform_indices = @transform_0, window_bounds = array<i64: 8, 64>}, {transform_indices = @transform_1, window_bounds = array<i64: 8, 32>}, {pipeline_mode = #tpu.pipeline_mode<synchronous>, transform_indices = @transform_2, window_bounds = array<i64: 64, 128>}, {pipeline_mode = #tpu.pipeline_mode<synchronous>, transform_indices = @transform_3, window_bounds = array<i64: 1, 128>}, {pipeline_mode = #tpu.pipeline_mode<synchronous>, transform_indices = @transform_4, window_bounds = array<i64: 1, 128, 128>}, {pipeline_mode = #tpu.pipeline_mode<synchronous>, transform_indices = @transform_5, window_bounds = array<i64: 1, 1, 128>}, {pipeline_mode = #tpu.pipeline_mode<synchronous>, transform_indices = @transform_6, window_bounds = array<i64: 128, 256>}, {pipeline_mode = #tpu.pipeline_mode<synchronous>, transform_indices = @transform_7, window_bounds = array<i64: 1, 256>}, {pipeline_mode = #tpu.pipeline_mode<synchronous>, transform_indices = @transform_8, window_bounds = array<i64: 32, 512>}, {pipeline_mode = #tpu.pipeline_mode<synchronous>, transform_indices = @transform_9, window_bounds = array<i64: 1, 512>}, {pipeline_mode = #tpu.pipeline_mode<synchronous>, transform_indices = @transform_10, window_bounds = array<i64: 1, 512>}, {pipeline_mode = #tpu.pipeline_mode<synchronous>, transform_indices = @transform_11, window_bounds = array<i64: 1, 256>}, {pipeline_mode = #tpu.pipeline_mode<synchronous>, transform_indices = @transform_12, window_bounds = array<i64: 16, 512>}, {pipeline_mode = #tpu.pipeline_mode<synchronous>, transform_indices = @transform_13, window_bounds = array<i64: 1, 512>}, {pipeline_mode = #tpu.pipeline_mode<synchronous>, transform_indices = @transform_14, window_bounds = array<i64: 1, 256>}, {pipeline_mode = #tpu.pipeline_mode<synchronous>, transform_indices = @transform_15, window_bounds = array<i64: 1, 256>}, {pipeline_mode = #tpu.pipeline_mode<synchronous>, transform_indices = @transform_16, window_bounds = array<i64: 1, 1>}, {}, {}, {}, {}, {}, {transform_indices = @transform_22, window_bounds = array<i64: 8, 1>}]} {
    %c0_i32 = arith.constant 0 : i32
    %0 = tpu.memref_slice %arg29[%c0_i32] : memref<5x!tpu.dma_semaphore, #tpu.memory_space<semaphore_mem>> -> memref<1x!tpu.dma_semaphore, #tpu.memory_space<semaphore_mem>>
    %1 = tpu.memref_squeeze %0 : memref<1x!tpu.dma_semaphore, #tpu.memory_space<semaphore_mem>> -> memref<!tpu.dma_semaphore, #tpu.memory_space<semaphore_mem>>
    tpu.enqueue_dma source(%arg18 : memref<512x512xbf16, #tpu.memory_space<any>>) target(%arg24 : memref<512x512xbf16, #tpu.memory_space<vmem>>) target_semaphore(%1 : memref<!tpu.dma_semaphore, #tpu.memory_space<semaphore_mem>>)
    %c1_i32 = arith.constant 1 : i32
    %2 = tpu.memref_slice %arg29[%c1_i32] : memref<5x!tpu.dma_semaphore, #tpu.memory_space<semaphore_mem>> -> memref<1x!tpu.dma_semaphore, #tpu.memory_space<semaphore_mem>>
    %3 = tpu.memref_squeeze %2 : memref<1x!tpu.dma_semaphore, #tpu.memory_space<semaphore_mem>> -> memref<!tpu.dma_semaphore, #tpu.memory_space<semaphore_mem>>
    tpu.enqueue_dma source(%arg19 : memref<512x256xbf16, #tpu.memory_space<any>>) target(%arg25 : memref<512x256xbf16, #tpu.memory_space<vmem>>) target_semaphore(%3 : memref<!tpu.dma_semaphore, #tpu.memory_space<semaphore_mem>>)
    %c2_i32 = arith.constant 2 : i32
    %4 = tpu.memref_slice %arg29[%c2_i32] : memref<5x!tpu.dma_semaphore, #tpu.memory_space<semaphore_mem>> -> memref<1x!tpu.dma_semaphore, #tpu.memory_space<semaphore_mem>>
    %5 = tpu.memref_squeeze %4 : memref<1x!tpu.dma_semaphore, #tpu.memory_space<semaphore_mem>> -> memref<!tpu.dma_semaphore, #tpu.memory_space<semaphore_mem>>
    tpu.enqueue_dma source(%arg20 : memref<256x512xbf16, #tpu.memory_space<any>>) target(%arg26 : memref<256x512xbf16, #tpu.memory_space<vmem>>) target_semaphore(%5 : memref<!tpu.dma_semaphore, #tpu.memory_space<semaphore_mem>>)
    %c3_i32 = arith.constant 3 : i32
    %6 = tpu.memref_slice %arg29[%c3_i32] : memref<5x!tpu.dma_semaphore, #tpu.memory_space<semaphore_mem>> -> memref<1x!tpu.dma_semaphore, #tpu.memory_space<semaphore_mem>>
    %7 = tpu.memref_squeeze %6 : memref<1x!tpu.dma_semaphore, #tpu.memory_space<semaphore_mem>> -> memref<!tpu.dma_semaphore, #tpu.memory_space<semaphore_mem>>
    tpu.enqueue_dma source(%arg21 : memref<256x512xbf16, #tpu.memory_space<any>>) target(%arg27 : memref<256x512xbf16, #tpu.memory_space<vmem>>) target_semaphore(%7 : memref<!tpu.dma_semaphore, #tpu.memory_space<semaphore_mem>>)
    %c4_i32 = arith.constant 4 : i32
    %8 = tpu.memref_slice %arg29[%c4_i32] : memref<5x!tpu.dma_semaphore, #tpu.memory_space<semaphore_mem>> -> memref<1x!tpu.dma_semaphore, #tpu.memory_space<semaphore_mem>>
    %9 = tpu.memref_squeeze %8 : memref<1x!tpu.dma_semaphore, #tpu.memory_space<semaphore_mem>> -> memref<!tpu.dma_semaphore, #tpu.memory_space<semaphore_mem>>
    tpu.enqueue_dma source(%arg22 : memref<512x256xbf16, #tpu.memory_space<any>>) target(%arg28 : memref<512x256xbf16, #tpu.memory_space<vmem>>) target_semaphore(%9 : memref<!tpu.dma_semaphore, #tpu.memory_space<semaphore_mem>>)
    %c0 = arith.constant 0 : index
    %c0_0 = arith.constant 0 : index
    %10 = vector.load %arg1[%c0, %c0_0] : memref<8x64xf32, #tpu.memory_space<vmem>>, vector<8x64xf32>
    %11 = vector.extract_strided_slice %10 {offsets = [0, 48], sizes = [8, 16], strides = [1, 1]} : vector<8x64xf32> to vector<8x16xf32>
    %12 = arith.truncf %10 : vector<8x64xf32> to vector<8x64xbf16>
    %c0_1 = arith.constant 0 : index
    %c0_2 = arith.constant 0 : index
    %13 = vector.load %arg3[%c0_1, %c0_2] : memref<64x128xbf16, #tpu.memory_space<vmem>>, vector<64x128xbf16>
    %cst = arith.constant dense<0.000000e+00> : vector<8x128xf32>
    %14 = tpu.matmul %12, %13, %cst {dimension_numbers = #tpu.dot_dimension_numbers<[1], [0], [0], [1], [0, 0, 1, 1], [], []>} : vector<8x64xbf16>, vector<64x128xbf16>, vector<8x128xf32> -> vector<8x128xf32>
    %c0_3 = arith.constant 0 : index
    %c0_4 = arith.constant 0 : index
    %15 = vector.load %arg4[%c0_3, %c0_4] : memref<1x128xf32, #tpu.memory_space<vmem>>, vector<1x128xf32>
    %16 = vector.broadcast %15 : vector<1x128xf32> to vector<8x128xf32>
    %17 = arith.addf %14, %16 : vector<8x128xf32>
    %cst_5 = arith.constant 0.000000e+00 : f32
    %18 = vector.broadcast %cst_5 : f32 to vector<8x128xf32>
    %19 = arith.maximumf %17, %18 : vector<8x128xf32>
    %20 = arith.truncf %19 : vector<8x128xf32> to vector<8x128xbf16>
    %c0_6 = arith.constant 0 : index
    %c0_7 = arith.constant 0 : index
    %c0_8 = arith.constant 0 : index
    %21 = vector.load %arg5[%c0_6, %c0_7, %c0_8] : memref<1x128x128xbf16, #tpu.memory_space<vmem>>, vector<1x128x128xbf16>
    %22 = vector.shape_cast %21 : vector<1x128x128xbf16> to vector<128x128xbf16>
    %cst_9 = arith.constant dense<0.000000e+00> : vector<8x128xf32>
    %23 = tpu.matmul %20, %22, %cst_9 {dimension_numbers = #tpu.dot_dimension_numbers<[1], [0], [0], [1], [0, 0, 1, 1], [], []>} : vector<8x128xbf16>, vector<128x128xbf16>, vector<8x128xf32> -> vector<8x128xf32>
    %c0_10 = arith.constant 0 : index
    %c0_11 = arith.constant 0 : index
    %c0_12 = arith.constant 0 : index
    %24 = vector.load %arg6[%c0_10, %c0_11, %c0_12] : memref<1x1x128xf32, #tpu.memory_space<vmem>>, vector<1x1x128xf32>
    %25 = vector.shape_cast %24 : vector<1x1x128xf32> to vector<1x128xf32>
    %26 = vector.broadcast %25 : vector<1x128xf32> to vector<8x128xf32>
    %27 = arith.addf %23, %26 : vector<8x128xf32>
    %cst_13 = arith.constant 0.000000e+00 : f32
    %28 = vector.broadcast %cst_13 : f32 to vector<8x128xf32>
    %29 = arith.maximumf %27, %28 : vector<8x128xf32>
    %30 = arith.truncf %29 : vector<8x128xf32> to vector<8x128xbf16>
    %c0_14 = arith.constant 0 : index
    %c0_15 = arith.constant 0 : index
    %31 = vector.load %arg7[%c0_14, %c0_15] : memref<128x256xbf16, #tpu.memory_space<vmem>>, vector<128x256xbf16>
    %cst_16 = arith.constant dense<0.000000e+00> : vector<8x256xf32>
    %32 = tpu.matmul %30, %31, %cst_16 {dimension_numbers = #tpu.dot_dimension_numbers<[1], [0], [0], [1], [0, 0, 1, 1], [], []>} : vector<8x128xbf16>, vector<128x256xbf16>, vector<8x256xf32> -> vector<8x256xf32>
    %c0_17 = arith.constant 0 : index
    %c0_18 = arith.constant 0 : index
    %33 = vector.load %arg8[%c0_17, %c0_18] : memref<1x256xf32, #tpu.memory_space<vmem>>, vector<1x256xf32>
    %34 = vector.broadcast %33 : vector<1x256xf32> to vector<8x256xf32>
    %35 = arith.addf %32, %34 : vector<8x256xf32>
    %c0_19 = arith.constant 0 : index
    %c0_20 = arith.constant 0 : index
    %36 = vector.load %arg2[%c0_19, %c0_20] : memref<8x32xf32, #tpu.memory_space<vmem>>, vector<8x32xf32>
    %37 = arith.truncf %36 : vector<8x32xf32> to vector<8x32xbf16>
    %c0_21 = arith.constant 0 : index
    %c0_22 = arith.constant 0 : index
    %38 = vector.load %arg9[%c0_21, %c0_22] : memref<32x512xbf16, #tpu.memory_space<vmem>>, vector<32x512xbf16>
    %cst_23 = arith.constant dense<0.000000e+00> : vector<8x512xf32>
    %39 = tpu.matmul %37, %38, %cst_23 {dimension_numbers = #tpu.dot_dimension_numbers<[1], [0], [0], [1], [0, 0, 1, 1], [], []>} : vector<8x32xbf16>, vector<32x512xbf16>, vector<8x512xf32> -> vector<8x512xf32>
    %c0_24 = arith.constant 0 : index
    %c0_25 = arith.constant 0 : index
    %40 = vector.load %arg10[%c0_24, %c0_25] : memref<1x512xf32, #tpu.memory_space<vmem>>, vector<1x512xf32>
    %41 = vector.broadcast %40 : vector<1x512xf32> to vector<8x512xf32>
    %42 = arith.addf %39, %41 : vector<8x512xf32>
    %cst_26 = arith.constant 0.000000e+00 : f32
    %43 = vector.broadcast %cst_26 : f32 to vector<8x512xf32>
    %44 = arith.maximumf %42, %43 : vector<8x512xf32>
    %c0_i32_27 = arith.constant 0 : i32
    %45 = tpu.memref_slice %arg29[%c0_i32_27] : memref<5x!tpu.dma_semaphore, #tpu.memory_space<semaphore_mem>> -> memref<1x!tpu.dma_semaphore, #tpu.memory_space<semaphore_mem>>
    %46 = tpu.memref_squeeze %45 : memref<1x!tpu.dma_semaphore, #tpu.memory_space<semaphore_mem>> -> memref<!tpu.dma_semaphore, #tpu.memory_space<semaphore_mem>>
    tpu.wait_dma2 semaphore(%46 : memref<!tpu.dma_semaphore, #tpu.memory_space<semaphore_mem>>) src(%arg18 : memref<512x512xbf16, #tpu.memory_space<any>>) dst(%arg24 : memref<512x512xbf16, #tpu.memory_space<vmem>>)
    %47 = arith.truncf %44 : vector<8x512xf32> to vector<8x512xbf16>
    %c0_28 = arith.constant 0 : index
    %c0_29 = arith.constant 0 : index
    %48 = vector.load %arg24[%c0_28, %c0_29] : memref<512x512xbf16, #tpu.memory_space<vmem>>, vector<512x512xbf16>
    %cst_30 = arith.constant dense<0.000000e+00> : vector<8x512xf32>
    %49 = tpu.matmul %47, %48, %cst_30 {dimension_numbers = #tpu.dot_dimension_numbers<[1], [0], [0], [1], [0, 0, 1, 1], [], []>} : vector<8x512xbf16>, vector<512x512xbf16>, vector<8x512xf32> -> vector<8x512xf32>
    %c0_31 = arith.constant 0 : index
    %c0_32 = arith.constant 0 : index
    %50 = vector.load %arg11[%c0_31, %c0_32] : memref<1x512xf32, #tpu.memory_space<vmem>>, vector<1x512xf32>
    %51 = vector.broadcast %50 : vector<1x512xf32> to vector<8x512xf32>
    %52 = arith.addf %49, %51 : vector<8x512xf32>
    %cst_33 = arith.constant 0.000000e+00 : f32
    %53 = vector.broadcast %cst_33 : f32 to vector<8x512xf32>
    %54 = arith.maximumf %52, %53 : vector<8x512xf32>
    %c1_i32_34 = arith.constant 1 : i32
    %55 = tpu.memref_slice %arg29[%c1_i32_34] : memref<5x!tpu.dma_semaphore, #tpu.memory_space<semaphore_mem>> -> memref<1x!tpu.dma_semaphore, #tpu.memory_space<semaphore_mem>>
    %56 = tpu.memref_squeeze %55 : memref<1x!tpu.dma_semaphore, #tpu.memory_space<semaphore_mem>> -> memref<!tpu.dma_semaphore, #tpu.memory_space<semaphore_mem>>
    tpu.wait_dma2 semaphore(%56 : memref<!tpu.dma_semaphore, #tpu.memory_space<semaphore_mem>>) src(%arg19 : memref<512x256xbf16, #tpu.memory_space<any>>) dst(%arg25 : memref<512x256xbf16, #tpu.memory_space<vmem>>)
    %57 = arith.truncf %54 : vector<8x512xf32> to vector<8x512xbf16>
    %c0_35 = arith.constant 0 : index
    %c0_36 = arith.constant 0 : index
    %58 = vector.load %arg25[%c0_35, %c0_36] : memref<512x256xbf16, #tpu.memory_space<vmem>>, vector<512x256xbf16>
    %cst_37 = arith.constant dense<0.000000e+00> : vector<8x256xf32>
    %59 = tpu.matmul %57, %58, %cst_37 {dimension_numbers = #tpu.dot_dimension_numbers<[1], [0], [0], [1], [0, 0, 1, 1], [], []>} : vector<8x512xbf16>, vector<512x256xbf16>, vector<8x256xf32> -> vector<8x256xf32>
    %c0_38 = arith.constant 0 : index
    %c0_39 = arith.constant 0 : index
    %60 = vector.load %arg12[%c0_38, %c0_39] : memref<1x256xf32, #tpu.memory_space<vmem>>, vector<1x256xf32>
    %61 = vector.broadcast %60 : vector<1x256xf32> to vector<8x256xf32>
    %62 = arith.addf %59, %61 : vector<8x256xf32>
    %c2_i32_40 = arith.constant 2 : i32
    %63 = tpu.memref_slice %arg29[%c2_i32_40] : memref<5x!tpu.dma_semaphore, #tpu.memory_space<semaphore_mem>> -> memref<1x!tpu.dma_semaphore, #tpu.memory_space<semaphore_mem>>
    %64 = tpu.memref_squeeze %63 : memref<1x!tpu.dma_semaphore, #tpu.memory_space<semaphore_mem>> -> memref<!tpu.dma_semaphore, #tpu.memory_space<semaphore_mem>>
    tpu.wait_dma2 semaphore(%64 : memref<!tpu.dma_semaphore, #tpu.memory_space<semaphore_mem>>) src(%arg20 : memref<256x512xbf16, #tpu.memory_space<any>>) dst(%arg26 : memref<256x512xbf16, #tpu.memory_space<vmem>>)
    %c3_i32_41 = arith.constant 3 : i32
    %65 = tpu.memref_slice %arg29[%c3_i32_41] : memref<5x!tpu.dma_semaphore, #tpu.memory_space<semaphore_mem>> -> memref<1x!tpu.dma_semaphore, #tpu.memory_space<semaphore_mem>>
    %66 = tpu.memref_squeeze %65 : memref<1x!tpu.dma_semaphore, #tpu.memory_space<semaphore_mem>> -> memref<!tpu.dma_semaphore, #tpu.memory_space<semaphore_mem>>
    tpu.wait_dma2 semaphore(%66 : memref<!tpu.dma_semaphore, #tpu.memory_space<semaphore_mem>>) src(%arg21 : memref<256x512xbf16, #tpu.memory_space<any>>) dst(%arg27 : memref<256x512xbf16, #tpu.memory_space<vmem>>)
    %c0_42 = arith.constant 0 : index
    %c0_43 = arith.constant 0 : index
    %67 = vector.load %arg14[%c0_42, %c0_43] : memref<1x512xf32, #tpu.memory_space<vmem>>, vector<1x512xf32>
    %68 = arith.truncf %35 : vector<8x256xf32> to vector<8x256xbf16>
    %c0_44 = arith.constant 0 : index
    %c0_45 = arith.constant 0 : index
    %69 = vector.load %arg26[%c0_44, %c0_45] : memref<256x512xbf16, #tpu.memory_space<vmem>>, vector<256x512xbf16>
    %cst_46 = arith.constant dense<0.000000e+00> : vector<8x512xf32>
    %70 = tpu.matmul %68, %69, %cst_46 {dimension_numbers = #tpu.dot_dimension_numbers<[1], [0], [0], [1], [0, 0, 1, 1], [], []>} : vector<8x256xbf16>, vector<256x512xbf16>, vector<8x512xf32> -> vector<8x512xf32>
    %71 = vector.broadcast %67 : vector<1x512xf32> to vector<8x512xf32>
    %72 = arith.addf %71, %70 : vector<8x512xf32>
    %73 = arith.truncf %62 : vector<8x256xf32> to vector<8x256xbf16>
    %c0_47 = arith.constant 0 : index
    %c0_48 = arith.constant 0 : index
    %74 = vector.load %arg27[%c0_47, %c0_48] : memref<256x512xbf16, #tpu.memory_space<vmem>>, vector<256x512xbf16>
    %cst_49 = arith.constant dense<0.000000e+00> : vector<8x512xf32>
    %75 = tpu.matmul %73, %74, %cst_49 {dimension_numbers = #tpu.dot_dimension_numbers<[1], [0], [0], [1], [0, 0, 1, 1], [], []>} : vector<8x256xbf16>, vector<256x512xbf16>, vector<8x512xf32> -> vector<8x512xf32>
    %76 = arith.addf %72, %75 : vector<8x512xf32>
    %77 = arith.truncf %11 : vector<8x16xf32> to vector<8x16xbf16>
    %c0_50 = arith.constant 0 : index
    %c0_51 = arith.constant 0 : index
    %78 = vector.load %arg13[%c0_50, %c0_51] : memref<16x512xbf16, #tpu.memory_space<vmem>>, vector<16x512xbf16>
    %cst_52 = arith.constant dense<0.000000e+00> : vector<8x512xf32>
    %79 = tpu.matmul %77, %78, %cst_52 {dimension_numbers = #tpu.dot_dimension_numbers<[1], [0], [0], [1], [0, 0, 1, 1], [], []>} : vector<8x16xbf16>, vector<16x512xbf16>, vector<8x512xf32> -> vector<8x512xf32>
    %80 = arith.addf %76, %79 : vector<8x512xf32>
    %cst_53 = arith.constant 0.000000e+00 : f32
    %81 = vector.broadcast %cst_53 : f32 to vector<8x512xf32>
    %82 = arith.maximumf %80, %81 : vector<8x512xf32>
    %c4_i32_54 = arith.constant 4 : i32
    %83 = tpu.memref_slice %arg29[%c4_i32_54] : memref<5x!tpu.dma_semaphore, #tpu.memory_space<semaphore_mem>> -> memref<1x!tpu.dma_semaphore, #tpu.memory_space<semaphore_mem>>
    %84 = tpu.memref_squeeze %83 : memref<1x!tpu.dma_semaphore, #tpu.memory_space<semaphore_mem>> -> memref<!tpu.dma_semaphore, #tpu.memory_space<semaphore_mem>>
    tpu.wait_dma2 semaphore(%84 : memref<!tpu.dma_semaphore, #tpu.memory_space<semaphore_mem>>) src(%arg22 : memref<512x256xbf16, #tpu.memory_space<any>>) dst(%arg28 : memref<512x256xbf16, #tpu.memory_space<vmem>>)
    %85 = arith.truncf %82 : vector<8x512xf32> to vector<8x512xbf16>
    %c0_55 = arith.constant 0 : index
    %c0_56 = arith.constant 0 : index
    %86 = vector.load %arg28[%c0_55, %c0_56] : memref<512x256xbf16, #tpu.memory_space<vmem>>, vector<512x256xbf16>
    %cst_57 = arith.constant dense<0.000000e+00> : vector<8x256xf32>
    %87 = tpu.matmul %85, %86, %cst_57 {dimension_numbers = #tpu.dot_dimension_numbers<[1], [0], [0], [1], [0, 0, 1, 1], [], []>} : vector<8x512xbf16>, vector<512x256xbf16>, vector<8x256xf32> -> vector<8x256xf32>
    %c0_58 = arith.constant 0 : index
    %c0_59 = arith.constant 0 : index
    %88 = vector.load %arg15[%c0_58, %c0_59] : memref<1x256xf32, #tpu.memory_space<vmem>>, vector<1x256xf32>
    %89 = vector.broadcast %88 : vector<1x256xf32> to vector<8x256xf32>
    %90 = arith.addf %87, %89 : vector<8x256xf32>
    %cst_60 = arith.constant 0.000000e+00 : f32
    %91 = vector.broadcast %cst_60 : f32 to vector<8x256xf32>
    %92 = arith.maximumf %90, %91 : vector<8x256xf32>
    %c0_61 = arith.constant 0 : index
    %c0_62 = arith.constant 0 : index
    %93 = vector.load %arg16[%c0_61, %c0_62] : memref<1x256xf32, #tpu.memory_space<vmem>>, vector<1x256xf32>
    %94 = vector.broadcast %93 : vector<1x256xf32> to vector<8x256xf32>
    %95 = arith.mulf %92, %94 : vector<8x256xf32>
    %cst_63 = arith.constant dense<0.000000e+00> : vector<8xf32>
    %96 = vector.multi_reduction <add>, %95, %cst_63 [1] : vector<8x256xf32> to vector<8xf32>
    %97 = vector.shape_cast %96 : vector<8xf32> to vector<8x1xf32>
    %c0_64 = arith.constant 0 : index
    %c0_65 = arith.constant 0 : index
    %98 = vector.load %arg17[%c0_64, %c0_65] : memref<1x1xf32, #tpu.memory_space<vmem>>, vector<1x1xf32>
    %99 = vector.broadcast %98 : vector<1x1xf32> to vector<8x1xf32>
    %100 = arith.addf %97, %99 : vector<8x1xf32>
    %c0_66 = arith.constant 0 : index
    %c0_67 = arith.constant 0 : index
    %101 = vector.load %arg23[%c0_66, %c0_67] : memref<8x1xf32, #tpu.memory_space<vmem>>, vector<8x1xf32>
    tpu.vector_store %arg23[%c0_66, %c0_67], %100 {strides = array<i32>} : memref<8x1xf32, #tpu.memory_space<vmem>>, vector<8x1xf32>,
    return
  }
  func.func @transform_0(%arg0: i32) -> (i32, i32) {
    %c0_i32 = arith.constant 0 : i32
    %c0_i32_0 = arith.constant 0 : i32
    return %arg0, %c0_i32 : i32, i32
  }
  func.func @transform_1(%arg0: i32) -> (i32, i32) {
    %c0_i32 = arith.constant 0 : i32
    %c0_i32_0 = arith.constant 0 : i32
    return %arg0, %c0_i32 : i32, i32
  }
  func.func @transform_2(%arg0: i32) -> (i32, i32) {
    %c0_i32 = arith.constant 0 : i32
    %c0_i32_0 = arith.constant 0 : i32
    %c0_i32_1 = arith.constant 0 : i32
    return %c0_i32, %c0_i32_0 : i32, i32
  }
  func.func @transform_3(%arg0: i32) -> (i32, i32) {
    %c0_i32 = arith.constant 0 : i32
    %c0_i32_0 = arith.constant 0 : i32
    %c0_i32_1 = arith.constant 0 : i32
    return %c0_i32, %c0_i32_0 : i32, i32
  }
  func.func @transform_4(%arg0: i32) -> (i32, i32, i32) {
    %c0_i32 = arith.constant 0 : i32
    %c0_i32_0 = arith.constant 0 : i32
    %c0_i32_1 = arith.constant 0 : i32
    %c0_i32_2 = arith.constant 0 : i32
    return %c0_i32, %c0_i32_0, %c0_i32_1 : i32, i32, i32
  }
  func.func @transform_5(%arg0: i32) -> (i32, i32, i32) {
    %c0_i32 = arith.constant 0 : i32
    %c0_i32_0 = arith.constant 0 : i32
    %c0_i32_1 = arith.constant 0 : i32
    %c0_i32_2 = arith.constant 0 : i32
    return %c0_i32, %c0_i32_0, %c0_i32_1 : i32, i32, i32
  }
  func.func @transform_6(%arg0: i32) -> (i32, i32) {
    %c0_i32 = arith.constant 0 : i32
    %c0_i32_0 = arith.constant 0 : i32
    %c0_i32_1 = arith.constant 0 : i32
    return %c0_i32, %c0_i32_0 : i32, i32
  }
  func.func @transform_7(%arg0: i32) -> (i32, i32) {
    %c0_i32 = arith.constant 0 : i32
    %c0_i32_0 = arith.constant 0 : i32
    %c0_i32_1 = arith.constant 0 : i32
    return %c0_i32, %c0_i32_0 : i32, i32
  }
  func.func @transform_8(%arg0: i32) -> (i32, i32) {
    %c0_i32 = arith.constant 0 : i32
    %c0_i32_0 = arith.constant 0 : i32
    %c0_i32_1 = arith.constant 0 : i32
    return %c0_i32, %c0_i32_0 : i32, i32
  }
  func.func @transform_9(%arg0: i32) -> (i32, i32) {
    %c0_i32 = arith.constant 0 : i32
    %c0_i32_0 = arith.constant 0 : i32
    %c0_i32_1 = arith.constant 0 : i32
    return %c0_i32, %c0_i32_0 : i32, i32
  }
  func.func @transform_10(%arg0: i32) -> (i32, i32) {
    %c0_i32 = arith.constant 0 : i32
    %c0_i32_0 = arith.constant 0 : i32
    %c0_i32_1 = arith.constant 0 : i32
    return %c0_i32, %c0_i32_0 : i32, i32
  }
  func.func @transform_11(%arg0: i32) -> (i32, i32) {
    %c0_i32 = arith.constant 0 : i32
    %c0_i32_0 = arith.constant 0 : i32
    %c0_i32_1 = arith.constant 0 : i32
    return %c0_i32, %c0_i32_0 : i32, i32
  }
  func.func @transform_12(%arg0: i32) -> (i32, i32) {
    %c0_i32 = arith.constant 0 : i32
    %c0_i32_0 = arith.constant 0 : i32
    %c0_i32_1 = arith.constant 0 : i32
    return %c0_i32, %c0_i32_0 : i32, i32
  }
  func.func @transform_13(%arg0: i32) -> (i32, i32) {
    %c0_i32 = arith.constant 0 : i32
    %c0_i32_0 = arith.constant 0 : i32
    %c0_i32_1 = arith.constant 0 : i32
    return %c0_i32, %c0_i32_0 : i32, i32
  }
  func.func @transform_14(%arg0: i32) -> (i32, i32) {
    %c0_i32 = arith.constant 0 : i32
    %c0_i32_0 = arith.constant 0 : i32
    %c0_i32_1 = arith.constant 0 : i32
    return %c0_i32, %c0_i32_0 : i32, i32
  }
  func.func @transform_15(%arg0: i32) -> (i32, i32) {
    %c0_i32 = arith.constant 0 : i32
    %c0_i32_0 = arith.constant 0 : i32
    %c0_i32_1 = arith.constant 0 : i32
    return %c0_i32, %c0_i32_0 : i32, i32
  }
  func.func @transform_16(%arg0: i32) -> (i32, i32) {
    %c0_i32 = arith.constant 0 : i32
    %c0_i32_0 = arith.constant 0 : i32
    %c0_i32_1 = arith.constant 0 : i32
    return %c0_i32, %c0_i32_0 : i32, i32
  }
  func.func @transform_22(%arg0: i32) -> (i32, i32) {
    %c0_i32 = arith.constant 0 : i32
    %c0_i32_0 = arith.constant 0 : i32
    return %arg0, %c0_i32 : i32, i32
  }
}

</mosaic_0001>

<bundles_post_ra>
// kernel: tpu_custom_call.1
= control target key start
LH: loop header
LB: loop body
LE: loop exit
PB: predicated region body
PF: predicated region fallthrough
CT: control target
= control target key end

     0   :  { %s2922_s0 = inlined_call_operand.hbm [shape: f32[8,64], index: 0, kind: input, shape index: {}]   ;;  %s2923_s1 = inlined_call_operand.hbm [shape: f32[8,32], index: 1, kind: input, shape index: {}]   ;;  %s2924_s2 = inlined_call_operand.hbm [shape: bf16[64,128], index: 2, kind: input, shape index: {}]   ;;  %s2925_s3 = inlined_call_operand.vmem [shape: f32[1,128], index: 3, kind: input, shape index: {}]   ;;  %s2926_s4 = inlined_call_operand.hbm [shape: bf16[1,128,128], index: 4, kind: input, shape index: {}]   ;;  %s2927_s5 = inlined_call_operand.hbm [shape: f32[1,1,128], index: 5, kind: input, shape index: {}]   ;;  %s2928_s6 = inlined_call_operand.hbm [shape: bf16[128,256], index: 6, kind: input, shape index: {}]   ;;  %s2929_s7 = inlined_call_operand.vmem [shape: f32[1,256], index: 7, kind: input, shape index: {}]   ;;  %s2930_s8 = inlined_call_operand.hbm [shape: bf16[32,512], index: 8, kind: input, shape index: {}]   ;;  %s2931_s9 = inlined_call_operand.vmem [shape: f32[1,512], index: 9, kind: input, shape index: {}]   ;;  %s2932_s10 = inlined_call_operand.vmem [shape: f32[1,512], index: 10, kind: input, shape index: {}]   ;;  %s2933_s11 = inlined_call_operand.vmem [shape: f32[1,256], index: 11, kind: input, shape index: {}]   ;;  %s2934_s12 = inlined_call_operand.vmem [shape: bf16[16,512], index: 12, kind: input, shape index: {}]   ;;  %s2935_s13 = inlined_call_operand.vmem [shape: f32[1,512], index: 13, kind: input, shape index: {}]   ;;  %s2936_s14 = inlined_call_operand.vmem [shape: f32[1,256], index: 14, kind: input, shape index: {}]   ;;  %s2937_s15 = inlined_call_operand.vmem [shape: f32[1,256], index: 15, kind: input, shape index: {}]   ;;  %s2938_s16 = inlined_call_operand.<no memory space> [shape: f32[1,1], index: 16, kind: input, shape index: {}]   ;;  %s2939_s17 = inlined_call_operand.hbm [shape: bf16[512,512], index: 17, kind: input, shape index: {}]   ;;  %s2940_s18 = inlined_call_operand.hbm [shape: bf16[512,256], index: 18, kind: input, shape index: {}]   ;;  %s2941_s19 = inlined_call_operand.hbm [shape: bf16[256,512], index: 19, kind: input, shape index: {}]   ;;  %s2942_s20 = inlined_call_operand.hbm [shape: bf16[256,512], index: 20, kind: input, shape index: {}]   ;;  %s2943_s21 = inlined_call_operand.hbm [shape: bf16[512,256], index: 21, kind: input, shape index: {}]   ;;  %s2944_s22 = inlined_call_operand.vmem [shape: f32[8,1], index: 22, kind: output, shape index: {}]  }
   0x1   :  { %2957 = sst [smem:[#allocation39_spill]] %s2922_s0  ;;  %v27_v0 = vstv %s2938_s16 }
   0x2   :  { %2958 = sst [smem:[#allocation40_spill]] %s2923_s1  ;;  %28 = vst [vmem:[#allocation8] sm:$0x1] %v27_v0 }
   0x3   :  { %2959 = sst [smem:[#allocation41_spill]] %s2924_s2 }
   0x4   :  { %2960 = sst [smem:[#allocation42_spill]] %s2925_s3 }
   0x5   :  { %2961 = sst [smem:[#allocation43_spill]] %s2926_s4 }
   0x6   :  { %2962 = sst [smem:[#allocation44_spill]] %s2927_s5 }
   0x7   :  { %2963 = sst [smem:[#allocation45_spill]] %s2928_s6 }
   0x8   :  { %2964 = sst [smem:[#allocation46_spill]] %s2937_s15 }
   0x9   :  { %2965 = sst [smem:[#allocation47_spill]] %s2944_s22 }
   0xa   :  { %29 = vsyncpa [#allocation10], 0 }
   0xb   :  { %30 = vsyncpa [#allocation12], 0 }
   0xc   :  { %31 = vsyncpa [#allocation15], 0 }
   0xd   :  { %32 = vsyncpa [#allocation18], 0  ;;  %s2431_s29 = smov [#allocation11]   ;;  %s2966_s23 = sld [smem:[#allocation40_spill]] }
   0xe   :  { %s49_s30 = sshll.u32 %s2431_s29, 4  ;;  %s50_s30 = int_to_ptr.vmem [resolvable:$true] %s49_s30 }
  0x13   :  { %s2259_s1 = scalar_lea.hbm %s2966_s23, 128 }
  0x14   :  { %p2260_p0 = scmp.ne.s32.totalorder %s2966_s23, %s2259_s1  ;;  %p2263_p1 = scmp.lt.u32.totalorder %s2259_s1, %s2966_s23 }
  0x16   :  { %p2265_p2 = pnand %p2263_p1, %p2260_p0 }
  0x18   :  { %2268 = shalt.err (!%p2265_p2)
}
  0x19   :  { %s2269_s16 = scalar_lea.vmem %s50_s30, 128  ;;  %p2274_p4 = scmp.lt.s32.totalorder %s50_s30, %s50_s30 }
  0x1a   :  { %p2270_p3 = scmp.ne.s32.totalorder %s50_s30, %s2269_s16  ;;  %p2275_p5 = scmp.lt.s32.totalorder %s2269_s16, %s2269_s16 }
  0x1c   :  { %p2276_p6 = por %p2275_p5, %p2274_p4 }
  0x1e   :  { %p2277_p7 = pnand %p2276_p6, %p2270_p3 }
  0x20   :  { %2280 = shalt.err (!%p2277_p7)
}
  0x21   :  { %52 = dma.hbm_to_vmem [thread:$0]  %s2966_s23, 128, %s50_s30, [#allocation12]  }
  0x22   :  { %s2432_s27 = smov [#allocation14]   ;;  %s2433_s28 = smov [#allocation17]  }
  0x23   :  { %s72_s3 = sshll.u32 %s2432_s27, 4  ;;  %s94_s29 = sshll.u32 %s2433_s28, 4  ;;  %s73_s3 = int_to_ptr.vmem [resolvable:$true] %s72_s3  ;;  %s95_s29 = int_to_ptr.vmem [resolvable:$true] %s94_s29 }
  0x24   :  { %s2967_s1 = sld [smem:[#allocation43_spill]] }
  0x2a   :  { %s2281_s5 = scalar_lea.hbm %s2967_s1, 1024 }
  0x2b   :  { %p2282_p8 = scmp.ne.s32.totalorder %s2967_s1, %s2281_s5  ;;  %p2285_p9 = scmp.lt.u32.totalorder %s2281_s5, %s2967_s1 }
  0x2d   :  { %p2287_p10 = pnand %p2285_p9, %p2282_p8 }
  0x2f   :  { %2290 = shalt.err (!%p2287_p10)
}
  0x30   :  { %s2291_s30 = scalar_lea.vmem %s73_s3, 1024  ;;  %p2296_p12 = scmp.lt.s32.totalorder %s73_s3, %s73_s3 }
  0x31   :  { %p2292_p11 = scmp.ne.s32.totalorder %s73_s3, %s2291_s30  ;;  %p2297_p13 = scmp.lt.s32.totalorder %s2291_s30, %s2291_s30 }
  0x33   :  { %p2298_p0 = por %p2297_p13, %p2296_p12 }
  0x35   :  { %p2299_p1 = pnand %p2298_p0, %p2292_p11 }
  0x37   :  { %2302 = shalt.err (!%p2299_p1)
}
  0x38   :  { %s2951_s23 = smov 64   ;;  %s2953_s26 = smov 4  }
  0x39   :  { %78 = dma.hbm_to_vmem [thread:$0]  %s2967_s1, 1024, %s73_s3, [#allocation15], %s2951_s23, %s2951_s23, %s2953_s26  }
  0x3a   :  { %s2968_s0 = sld [smem:[#allocation45_spill]] }
  0x40   :  { %s2303_s5 = scalar_lea.hbm %s2968_s0, 2048 }
  0x41   :  { %p2304_p2 = scmp.ne.s32.totalorder %s2968_s0, %s2303_s5  ;;  %p2307_p3 = scmp.lt.u32.totalorder %s2303_s5, %s2968_s0 }
  0x43   :  { %p2309_p4 = pnand %p2307_p3, %p2304_p2 }
  0x45   :  { %2312 = shalt.err (!%p2309_p4)
}
  0x46   :  { %s2313_s30 = scalar_lea.vmem %s95_s29, 2048  ;;  %p2318_p6 = scmp.lt.s32.totalorder %s95_s29, %s95_s29 }
  0x47   :  { %p2314_p5 = scmp.ne.s32.totalorder %s95_s29, %s2313_s30  ;;  %p2319_p7 = scmp.lt.s32.totalorder %s2313_s30, %s2313_s30 }
  0x49   :  { %p2320_p8 = por %p2319_p7, %p2318_p6 }
  0x4b   :  { %p2321_p9 = pnand %p2320_p8, %p2314_p5 }
  0x4d   :  { %2324 = shalt.err (!%p2321_p9)
}
  0x4e   :  { %s2955_s3 = smov 128   ;;  %s2437_s1 = smov 8  }
  0x4f   :  { %100 = dma.hbm_to_vmem [thread:$0]  %s2968_s0, 2048, %s95_s29, [#allocation18], %s2955_s3, %s2955_s3, %s2437_s1  }
  0x50   :  { %s2438_s28 = smov [#allocation9]   ;;  %s2439_s5 = smov [#allocation13]  }
  0x51   :  { %s39_s4 = sshll.u32 %s2438_s28, 4  ;;  %s58_s24 = sshll.u32 %s2439_s5, 4  ;;  %s40_s4 = int_to_ptr.vmem [resolvable:$true] %s39_s4  ;;  %s59_s24 = int_to_ptr.vmem [resolvable:$true] %s58_s24 }
  0x52   :  { %s2969_s16 = sld [smem:[#allocation39_spill]] }
  0x58   :  { %s2325_s30 = scalar_lea.hbm %s2969_s16, 128 }
  0x59   :  { %p2326_p10 = scmp.ne.s32.totalorder %s2969_s16, %s2325_s30  ;;  %p2329_p11 = scmp.lt.u32.totalorder %s2325_s30, %s2969_s16 }
  0x5b   :  { %p2331_p12 = pnand %p2329_p11, %p2326_p10 }
  0x5d   :  { %2334 = shalt.err (!%p2331_p12)
}
  0x5e   :  { %s2335_s29 = scalar_lea.vmem %s40_s4, 128  ;;  %p2340_p0 = scmp.lt.s32.totalorder %s40_s4, %s40_s4 }
  0x5f   :  { %p2336_p13 = scmp.ne.s32.totalorder %s40_s4, %s2335_s29  ;;  %p2341_p1 = scmp.lt.s32.totalorder %s2335_s29, %s2335_s29 }
  0x61   :  { %p2342_p2 = por %p2341_p1, %p2340_p0 }
  0x63   :  { %p2343_p3 = pnand %p2342_p2, %p2336_p13 }
  0x65   :  { %2346 = shalt.err (!%p2343_p3)
}
  0x66   :  { %42 = dma.hbm_to_vmem [thread:$0]  %s2969_s16, 128, %s40_s4, [#allocation10]  }
  0x67   :  { %s2970_s2 = sld [smem:[#allocation41_spill]] }
  0x6d   :  { %s2347_s27 = scalar_lea.hbm %s2970_s2, 512 }
  0x6e   :  { %p2348_p4 = scmp.ne.s32.totalorder %s2970_s2, %s2347_s27  ;;  %p2351_p5 = scmp.lt.u32.totalorder %s2347_s27, %s2970_s2 }
  0x70   :  { %p2353_p6 = pnand %p2351_p5, %p2348_p4 }
  0x72   :  { %2356 = shalt.err (!%p2353_p6)
}
  0x73   :  { %s2357_s6 = scalar_lea.vmem %s59_s24, 512  ;;  %p2362_p8 = scmp.lt.s32.totalorder %s59_s24, %s59_s24 }
  0x74   :  { %p2358_p7 = scmp.ne.s32.totalorder %s59_s24, %s2357_s6  ;;  %p2363_p9 = scmp.lt.s32.totalorder %s2357_s6, %s2357_s6 }
  0x76   :  { %p2364_p10 = por %p2363_p9, %p2362_p8 }
  0x78   :  { %p2365_p11 = pnand %p2364_p10, %p2358_p7 }
  0x7a   :  { %2368 = shalt.err (!%p2365_p11)
}
  0x7b   :  { %s2971_s4 = smov 4   ;;  %s2972_s25 = smov 64  }
  0x7c   :  { %64 = dma.hbm_to_vmem [thread:$0]  %s2970_s2, 512, %s59_s24, [#allocation12], %s2972_s25, %s2972_s25, %s2971_s4  }
  0x7d   :  { %s2440_s29 = smov [#allocation16]   ;;  %s2441_s1 = smov [#allocation19]  }
  0x7e   :  { %s85_s0 = sshll.u32 %s2440_s29, 4  ;;  %s108_s23 = sshll.u32 %s2441_s1, 4  ;;  %s86_s0 = int_to_ptr.vmem [resolvable:$true] %s85_s0  ;;  %s109_s23 = int_to_ptr.vmem [resolvable:$true] %s108_s23 }
  0x7f   :  { %s2973_s15 = sld [smem:[#allocation44_spill]] }
  0x85   :  { %s2369_s22 = scalar_lea.hbm %s2973_s15, 16 }
  0x86   :  { %p2370_p12 = scmp.ne.s32.totalorder %s2973_s15, %s2369_s22  ;;  %p2373_p13 = scmp.lt.u32.totalorder %s2369_s22, %s2973_s15 }
  0x88   :  { %p2375_p0 = pnand %p2373_p13, %p2370_p12 }
  0x8a   :  { %2378 = shalt.err (!%p2375_p0)
}
  0x8b   :  { %s2379_s24 = scalar_lea.vmem %s86_s0, 16  ;;  %s2383_s2 = scalar_lea.vmem %s86_s0, 32 }
  0x8c   :  { %p2380_p1 = scmp.ne.s32.totalorder %s86_s0, %s2379_s24  ;;  %p2384_p2 = scmp.lt.s32.totalorder %s86_s0, %s86_s0 }
  0x8d   :  { %p2385_p3 = scmp.lt.s32.totalorder %s2383_s2, %s2379_s24 }
  0x8f   :  { %p2386_p4 = por %p2385_p3, %p2384_p2 }
  0x91   :  { %p2387_p5 = pnand %p2386_p4, %p2380_p1 }
  0x93   :  { %2390 = shalt.err (!%p2387_p5)
}
  0x94   :  { %88 = dma.hbm_to_vmem [thread:$0]  %s2973_s15, 16, %s86_s0, [#allocation15]  }
  0x95   :  { %s2391_s3 = scalar_lea.hbm %s2930_s8, 1024 }
  0x96   :  { %p2392_p6 = scmp.ne.s32.totalorder %s2930_s8, %s2391_s3  ;;  %p2395_p7 = scmp.lt.u32.totalorder %s2391_s3, %s2930_s8 }
  0x98   :  { %p2397_p8 = pnand %p2395_p7, %p2392_p6 }
  0x9a   :  { %2400 = shalt.err (!%p2397_p8)
}
  0x9b   :  { %s2401_s5 = scalar_lea.vmem %s109_s23, 1024  ;;  %p2406_p10 = scmp.lt.s32.totalorder %s109_s23, %s109_s23 }
  0x9c   :  { %p2402_p9 = scmp.ne.s32.totalorder %s109_s23, %s2401_s5  ;;  %p2407_p11 = scmp.lt.s32.totalorder %s2401_s5, %s2401_s5 }
  0x9e   :  { %p2408_p12 = por %p2407_p11, %p2406_p10 }
  0xa0   :  { %p2409_p13 = pnand %p2408_p12, %p2402_p9 }
  0xa2   :  { %2412 = shalt.err (!%p2409_p13)
}
  0xa3   :  { %s2442_s0 = smov 256   ;;  %s2443_s15 = smov 16  }
  0xa4   :  { %114 = dma.hbm_to_vmem [thread:$0]  %s2930_s8, 1024, %s109_s23, [#allocation18], %s2442_s0, %s2442_s0, %s2443_s15  }
  0xa5   :  { %2413 = dma.done.wait [#allocation10], 128  }
  0xa6   :  { %2414 = vsyncadd [#allocation10], 4294967168 }
  0xa7   :  { %2415 = dma.done.wait [#allocation12], 640  }
  0xa8   :  { %2416 = vsyncadd [#allocation12], 4294966656 }
  0xa9   :  { %2417 = dma.done.wait [#allocation15], 1040  }
  0xaa   :  { %2418 = vsyncadd [#allocation15], 4294966256 }
  0xab   :  { %2419 = dma.done.wait [#allocation18], 3072  }
  0xac   :  { %2420 = vsyncadd [#allocation18], 4294964224  ;;  %s157_s2 = sld [smem:[#allocation0]]   ;;  %s2444_s16 = smov 512   ;;  %v2445_v1 = vmov 0.0   ;;  %vm2446_vm0 = vmmov 0   ;;  %v546_v59 = vlaneseq }
  0xad   :  { %169 = sst [smem:[#allocation21]] %s2444_s16  ;;  %2095 = vmatprep.subr.bf16.mxu0 %v2445_v1  ;;  %2103 = vmatprep.mubr.msk.bf16.mxu0 %vm2446_vm0, %v2445_v1  ;;  %s2447_s8 = smov [#allocation2]   ;;  %vm369_vm1 = vcmask 523264   ;;  %v2463_v43 = vmov 0   ;;  %vm749_vm2 = vcmask 261120  }
  0xae   :  { %171 = sst [smem:[#allocation21 + $0x1]] %s2444_s16  ;;  %2107 = vmatprep.subr.bf16.mxu1 %v2445_v1  ;;  %2123 = vmatprep.mubr.msk.bf16.mxu1 %vm2446_vm0, %v2445_v1  ;;  %s165_s23 = sshll.u32 %s2447_s8, 4  ;;  %v547_v60 = vshrl.u32 %v546_v59, 7  ;;  %s166_s23 = int_to_ptr.vmem [resolvable:$true] %s165_s23 }
  0xaf   :  { %173 = sst [smem:[#allocation21 + $0x2]] %s2971_s4  ;;  %s2974_s30 = smov 128  }
  0xb0   :  { %175 = sst [smem:[#allocation21 + $0x3]] %s2972_s25  ;;  %s2448_s29 = smov 2   ;;  %v2772_v62 = vsub.s32 2, %v547_v60  ;;  %v2774_v63 = vsub.s32 3, %v547_v60 }
  0xb1   :  { %177 = sst [smem:[#allocation21 + $0x4]] %s2974_s30  ;;  %s2449_s26 = smov [#allocation7]  }
  0xb2   :  { %179 = sst [smem:[#allocation21 + $0x5]] %s2448_s29  ;;  %s2018_s1 = sshll.u32 %s157_s2, 26 }
  0xb3   :  { %181 = sst [smem:[#allocation21 + $0x6]] %s2442_s0  ;;  %s2688_s3 = sadd.s32 134217728, %s2018_s1 }
  0xb4   :  { %183 = sst [smem:[#allocation21 + $0x7]] %s2972_s25  ;;  %s2450_s27 = smov [#allocation20]  }
  0xb5   :  { %185 = sst [smem:[#allocation21 + $0x8]] %s2971_s4  ;;  %s2451_s5 = smov [#allocation3]  }
  0xb6   :  { %187 = dma.general %s2939_s17, 16384, %s166_s23, %s2449_s26, %s2450_s27, [#allocation21], %s2688_s3, 0  }
  0xb7   :  { %204 = sst [smem:[#allocation23]] %s2442_s0  ;;  %s200_s15 = sshll.u32 %s2451_s5, 4  ;;  %s201_s15 = int_to_ptr.vmem [resolvable:$true] %s200_s15 }
  0xb8   :  { %206 = sst [smem:[#allocation23 + $0x1]] %s2442_s0  ;;  %s2452_s17 = smov [#allocation7 + $0x1]  }
  0xb9   :  { %208 = sst [smem:[#allocation23 + $0x2]] %s2448_s29  ;;  %s2453_s6 = smov [#allocation22]  }
  0xba   :  { %210 = sst [smem:[#allocation23 + $0x3]] %s2972_s25  ;;  %s2454_s8 = smov [#allocation4]  }
  0xbb   :  { %212 = sst [smem:[#allocation23 + $0x4]] %s2974_s30  ;;  %s235_s23 = sshll.u32 %s2454_s8, 4  ;;  %s236_s23 = int_to_ptr.vmem [resolvable:$true] %s235_s23 }
  0xbc   :  { %214 = sst [smem:[#allocation23 + $0x5]] %s2448_s29  ;;  %s2456_s1 = smov [#allocation24]  }
  0xbd   :  { %216 = sst [smem:[#allocation23 + $0x6]] %s2974_s30  ;;  %s2457_s22 = smov [#allocation5]  }
  0xbe   :  { %218 = sst [smem:[#allocation23 + $0x7]] %s2972_s25  ;;  %s270_s28 = sshll.u32 %s2457_s22, 4  ;;  %s271_s28 = int_to_ptr.vmem [resolvable:$true] %s270_s28 }
  0xbf   :  { %220 = sst [smem:[#allocation23 + $0x8]] %s2971_s4  ;;  %s2459_s5 = smov [#allocation26]  }
  0xc0   :  { %222 = dma.general %s2940_s18, 8192, %s201_s15, %s2452_s17, %s2453_s6, [#allocation23], %s2688_s3, 0  }
  0xc1   :  { %239 = sst [smem:[#allocation25]] %s2444_s16  ;;  %s2455_s18 = smov [#allocation7 + $0x2]  }
  0xc2   :  { %241 = sst [smem:[#allocation25 + $0x1]] %s2444_s16  ;;  %s2460_s17 = smov [#allocation6]  }
  0xc3   :  { %243 = sst [smem:[#allocation25 + $0x2]] %s2971_s4  ;;  %s305_s6 = sshll.u32 %s2460_s17, 4  ;;  %s306_s6 = int_to_ptr.vmem [resolvable:$true] %s305_s6 }
  0xc4   :  { %245 = sst [smem:[#allocation25 + $0x3]] %s2972_s25  ;;  %s2462_s24 = smov [#allocation28]  }
  0xc5   :  { %247 = sst [smem:[#allocation25 + $0x4]] %s2974_s30 }
  0xc6   :  { %249 = sst [smem:[#allocation25 + $0x5]] %s2448_s29 }
  0xc7   :  { %251 = sst [smem:[#allocation25 + $0x6]] %s2442_s0 }
  0xc8   :  { %253 = sst [smem:[#allocation25 + $0x7]] %s2972_s25 }
  0xc9   :  { %255 = sst [smem:[#allocation25 + $0x8]] %s2971_s4 }
  0xca   :  { %257 = dma.general %s2941_s19, 8192, %s236_s23, %s2455_s18, %s2456_s1, [#allocation25], %s2688_s3, 0  }
  0xcb   :  { %274 = sst [smem:[#allocation27]] %s2444_s16  ;;  %s2458_s19 = smov [#allocation7 + $0x3]  }
  0xcc   :  { %276 = sst [smem:[#allocation27 + $0x1]] %s2444_s16 }
  0xcd   :  { %278 = sst [smem:[#allocation27 + $0x2]] %s2971_s4 }
  0xce   :  { %280 = sst [smem:[#allocation27 + $0x3]] %s2972_s25 }
  0xcf   :  { %282 = sst [smem:[#allocation27 + $0x4]] %s2974_s30 }
  0xd0   :  { %284 = sst [smem:[#allocation27 + $0x5]] %s2448_s29 }
  0xd1   :  { %286 = sst [smem:[#allocation27 + $0x6]] %s2442_s0 }
  0xd2   :  { %288 = sst [smem:[#allocation27 + $0x7]] %s2972_s25 }
  0xd3   :  { %290 = sst [smem:[#allocation27 + $0x8]] %s2971_s4 }
  0xd4   :  { %292 = dma.general %s2942_s20, 8192, %s271_s28, %s2458_s19, %s2459_s5, [#allocation27], %s2688_s3, 0  }
  0xd5   :  { %309 = sst [smem:[#allocation29]] %s2442_s0  ;;  %s2461_s20 = smov [#allocation7 + $0x4]  }
  0xd6   :  { %311 = sst [smem:[#allocation29 + $0x1]] %s2442_s0 }
  0xd7   :  { %313 = sst [smem:[#allocation29 + $0x2]] %s2448_s29 }
  0xd8   :  { %315 = sst [smem:[#allocation29 + $0x3]] %s2972_s25 }
  0xd9   :  { %317 = sst [smem:[#allocation29 + $0x4]] %s2974_s30 }
  0xda   :  { %319 = sst [smem:[#allocation29 + $0x5]] %s2448_s29 }
  0xdb   :  { %321 = sst [smem:[#allocation29 + $0x6]] %s2974_s30 }
  0xdc   :  { %323 = sst [smem:[#allocation29 + $0x7]] %s2972_s25 }
  0xdd   :  { %325 = sst [smem:[#allocation29 + $0x8]] %s2971_s4 }
  0xde   :  { %327 = dma.general %s2943_s21, 8192, %s306_s6, %s2461_s20, %s2462_s24, [#allocation29], %s2688_s3, 0  }
  0xdf   :  { %v2205_v2 = vld [vmem:[#allocation13] sm:$0xff]   ;;  %v2206_v3 = vld [vmem:[#allocation13 + $0x8] sm:$0xff]   ;;  %v2207_v5 = vld [vmem:[#allocation13 + $0x10] sm:$0xff]   ;;  %s2975_s25 = sld [smem:[#allocation42_spill]] }
  0xe0   :  { %2096 = vmatpush3.bf16.msra.mxu0 %v2205_v2  ;;  %v2209_v4 = vld [vmem:[#allocation14] sm:$0xff]   ;;  %v2210_v6 = vld [vmem:[#allocation14 + $0x8] sm:$0xff]   ;;  %v2208_v7 = vld [vmem:[#allocation13 + $0x18] sm:$0xff]  }
  0xe1   :  { %2097 = vmatprep.subr.bf16.mxu0 %v2445_v1  ;;  %2108 = vmatpush3.bf16.msra.mxu1 %v2209_v4  ;;  %v328_v8 = vld [vmem:[#allocation9] sm:$0xff]  ;;  %v2212_v11 = vld [vmem:[#allocation14 + $0x18] sm:$0xff]   ;;  %v2213_v12 = vld [vmem:[#allocation14 + $0x20] sm:$0xff]  }
  0xe2   :  { %2109 = vmatprep.subr.bf16.mxu1 %v2445_v1  ;;  %v2211_v9 = vld [vmem:[#allocation14 + $0x10] sm:$0xff]   ;;  %v2753_v10 = vpack.c.bf16 %v328_v8, %v328_v8  ;;  %v2214_v13 = vld [vmem:[#allocation14 + $0x28] sm:$0xff]   ;;  %v2216_v15 = vld [vmem:[#allocation14 + $0x38] sm:$0xff]  }
  0xe3   :  { %v2215_v14 = vld [vmem:[#allocation14 + $0x30] sm:$0xff]   ;;  %v2217_v16 = vld [vmem:[#allocation17] ss:$8 sps:$4 sm:$0xff]   ;;  %v677_v46 = vld [vmem:[#allocation11] sm:$0xff] }
  0xe4   :  { %2098 = vmatpush3.bf16.msra.mxu0 %v2206_v3  ;;  %v2219_v17 = vld [vmem:[#allocation17 + $0x4] ss:$8 sps:$4 sm:$0xff]   ;;  %v2222_v18 = vld [vmem:[#allocation17 + $0x14] ss:$8 sps:$4 sm:$0xff]   ;;  %v2220_v19 = vld [vmem:[#allocation17 + $0x10] ss:$8 sps:$4 sm:$0xff]   ;;  %v678_v47 = vpack.c.bf16 %v677_v46, %v677_v46 }
  0xe5   :  { %2099 = vmatprep.subr.bf16.mxu0 %v2445_v1  ;;  %2110 = vmatpush3.bf16.msra.mxu1 %v2210_v6  ;;  %v2225_v20 = vld [vmem:[#allocation17 + $0x24] ss:$8 sps:$4 sm:$0xff]   ;;  %v2223_v21 = vld [vmem:[#allocation17 + $0x20] ss:$8 sps:$4 sm:$0xff]   ;;  %v2228_v22 = vld [vmem:[#allocation17 + $0x34] ss:$8 sps:$4 sm:$0xff]  }
  0xe6   :  { %2111 = vmatprep.subr.bf16.mxu1 %v2445_v1  ;;  %v2226_v23 = vld [vmem:[#allocation17 + $0x30] ss:$8 sps:$4 sm:$0xff]   ;;  %v2231_v24 = vld [vmem:[#allocation17 + $0x44] ss:$8 sps:$4 sm:$0xff]   ;;  %v2229_v25 = vld [vmem:[#allocation17 + $0x40] ss:$8 sps:$4 sm:$0xff]  }
  0xe7   :  { %v2234_v26 = vld [vmem:[#allocation17 + $0x54] ss:$8 sps:$4 sm:$0xff]   ;;  %v2232_v27 = vld [vmem:[#allocation17 + $0x50] ss:$8 sps:$4 sm:$0xff]   ;;  %v2237_v28 = vld [vmem:[#allocation17 + $0x64] ss:$8 sps:$4 sm:$0xff]  }
  0xe8   :  { %2100 = vmatpush3.bf16.msra.mxu0 %v2207_v5  ;;  %v2235_v29 = vld [vmem:[#allocation17 + $0x60] ss:$8 sps:$4 sm:$0xff]   ;;  %v2028_v30 = vld [vmem:[%s2975_s25] ss:$0 sm:$0xff]  ;;  %v2240_v38 = vld [vmem:[#allocation17 + $0x74] ss:$8 sps:$4 sm:$0xff]  }
  0xe9   :  { %2101 = vmatprep.subr.bf16.mxu0 %v2445_v1  ;;  %2112 = vmatpush3.bf16.msra.mxu1 %v2211_v9  ;;  %v2238_v39 = vld [vmem:[#allocation17 + $0x70] ss:$8 sps:$4 sm:$0xff]   ;;  %v2243_v40 = vld [vmem:[#allocation19 + $0xc] ss:$16 sps:$4 sm:$0xff]   ;;  %v2246_v42 = vld [vmem:[#allocation19 + $0x4] ss:$16 sps:$4 sm:$0xff]  }
  0xea   :  { %2113 = vmatprep.subr.bf16.mxu1 %v2445_v1  ;;  %v2241_v41 = vld [vmem:[#allocation19 + $0x8] ss:$16 sps:$4 sm:$0xff]   ;;  %v2249_v44 = vld [vmem:[#allocation19 + $0x2c] ss:$16 sps:$4 sm:$0xff]   ;;  %v2244_v55 = vld [vmem:[#allocation19] ss:$16 sps:$4 sm:$0xff]  }
  0xeb   :  { %v2247_v45 = vld [vmem:[#allocation19 + $0x28] ss:$16 sps:$4 sm:$0xff]   ;;  %v2034_v48 = vld [vmem:[#allocation16] ss:$0 sm:$0xff]  ;;  %v2252_v57 = vld [vmem:[#allocation19 + $0x24] ss:$16 sps:$4 sm:$0xff]  }
  0xec   :  { %2102 = vmatpush3.bf16.msra.mxu0 %v2208_v7  ;;  %v2250_v58 = vld [vmem:[#allocation19 + $0x20] ss:$16 sps:$4 sm:$0xff]  }
  0xed   :  { %2114 = vmatpush3.bf16.msra.mxu1 %v2212_v11  ;;  %636 = vmatprep.subr.bf16.mxu0 %v2219_v17  ;;  %v687_v61 = vld [vmem:[%s2931_s9] sm:$0xf]  ;;  %v2784_v11 = vsub.s32 0, %v547_v60 }
  0xee   :  { %2115 = vmatprep.subr.bf16.mxu1 %v2445_v1  ;;  %v700_v0 = vrot.slane %v687_v61, %v2772_v62  ;;  %v704_v2 = vrot.slane %v687_v61, %v2774_v63 }
  0xef   :  { %2104 = vmatmul.mubr.msk.bf16.vlgmr.msra.gmra.mrb[0].mxu0 %vm369_vm1, %v2753_v10 }
  0xf0   :  { %637 = vmatpush1.bf16.msra.mxu0 %v2217_v16  ;;  %668 = vmatprep.mubr.bf16.mxu0 %v2463_v43 }
  0xf1   :  { %2116 = vmatpush3.bf16.msra.mxu1 %v2213_v12  ;;  %638 = vmatprep.subr.bf16.mxu0 %v2222_v18  ;;  %v544_v12 = vld [vmem:[%s2929_s7] sm:$0x3] }
  0xf2   :  { %2117 = vmatprep.subr.bf16.mxu1 %v2445_v1 }
  0xf4   :  { %639 = vmatpush1.bf16.msra.mxu0 %v2220_v19 }
  0xf5   :  { %2118 = vmatpush3.bf16.msra.mxu1 %v2214_v13  ;;  %640 = vmatprep.subr.bf16.mxu0 %v2225_v20  ;;  %v2789_v13 = vsub.s32 1, %v547_v60 }
  0xf6   :  { %2119 = vmatprep.subr.bf16.mxu1 %v2445_v1 }
  0xf8   :  { %641 = vmatpush1.bf16.msra.mxu0 %v2223_v21 }
  0xf9   :  { %2120 = vmatpush3.bf16.msra.mxu1 %v2215_v14  ;;  %642 = vmatprep.subr.bf16.mxu0 %v2228_v22  ;;  %v549_v14 = vrot.slane %v544_v12, %v2784_v11  ;;  %v692_v22 = vrot.slane %v687_v61, %v2784_v11 }
  0xfa   :  { %2121 = vmatprep.subr.bf16.mxu1 %v2445_v1 }
  0xfc   :  { %643 = vmatpush1.bf16.msra.mxu0 %v2226_v23  ;;  %v696_v23 = vrot.slane %v687_v61, %v2789_v13 }
  0xfd   :  { %2122 = vmatpush3.bf16.msra.mxu1 %v2216_v15  ;;  %644 = vmatprep.subr.bf16.mxu0 %v2231_v24  ;;  %v553_v15 = vrot.slane %v544_v12, %v2789_v13 }
  0xfe   :  { %794 = vmatprep.subr.bf16.mxu1 %v2243_v40 }
 0x100   :  { %645 = vmatpush1.bf16.msra.mxu0 %v2229_v25 }
 0x101   :  { %646 = vmatprep.subr.bf16.mxu0 %v2234_v26 }
 0x104   :  { %647 = vmatpush1.bf16.msra.mxu0 %v2232_v27 }
 0x105   :  { %648 = vmatprep.subr.bf16.mxu0 %v2237_v28 }
 0x108   :  { %649 = vmatpush1.bf16.msra.mxu0 %v2235_v29 }
 0x109   :  { %650 = vmatprep.subr.bf16.mxu0 %v2240_v38 }
 0x10c   :  { %651 = vmatpush1.bf16.msra.mxu0 %v2238_v39 }
 0x10d   :  { %753 = vmatprep.subr.bf16.mxu0 %v2246_v42 }
 0x1c2   :  { %v407_v31 = vpop.f32.mrb[0].mxu0 }
 0x1c3   :  { %v408_v32 = vadd.f32 %v2028_v30, %v407_v31  ;;  %v2105_v33 = vpop.f32.mrb[1].mxu0 }
 0x1c4   :  { %v410_v34 = vpop.f32.mrb[2].mxu0 }
 0x1c5   :  { %v413_v35 = vmax.f32 %v408_v32, 0.0  ;;  %v2106_v36 = vpop.f32.mrb[3].mxu0 }
 0x1c7   :  { %v414_v37 = vpack.c.bf16 %v413_v35, %v413_v35 }
 0x1c9   :  { %2124 = vmatmul.mubr.bf16.vlgmr.msra.gmra.mrb[0].mxu1 %v414_v37 }
 0x1ca   :  { %795 = vmatpush1.bf16.msra.mxu1 %v2241_v41  ;;  %826 = vmatprep.mubr.bf16.mxu1 %v2463_v43 }
 0x1cb   :  { %796 = vmatprep.subr.bf16.mxu1 %v2249_v44 }
 0x1ce   :  { %797 = vmatpush1.bf16.msra.mxu1 %v2247_v45 }
 0x1d1   :  { %2068 = vmatmul.mubr.msk.bf16.vlgmr.msra.gmra.mrb[4].mxu1 %vm749_vm2, %v678_v47 }
 0x29c   :  { %v520_v49 = vpop.f32.mrb[0].mxu1 }
 0x29d   :  { %v521_v50 = vadd.f32 %v2034_v48, %v520_v49  ;;  %v2125_v51 = vpop.f32.mrb[1].mxu1 }
 0x29e   :  { %v523_v52 = vpop.f32.mrb[2].mxu1 }
 0x29f   :  { %v526_v53 = vmax.f32 %v521_v50, 0.0  ;;  %v2126_v54 = vpop.f32.mrb[3].mxu1 }
 0x2a1   :  { %v527_v56 = vpack.c.bf16 %v526_v53, %v526_v53 }
 0x2a3   :  { %669 = vmatmul.mubr.bf16.vlgmr.msra.gmra.mrb[4].mxu0 %v527_v56 }
 0x2a4   :  { %754 = vmatpush1.bf16.msra.mxu0 %v2244_v55  ;;  %785 = vmatprep.mubr.bf16.mxu0 %v2463_v43  ;;  %v828_v1 = vpop.f32.mrb[4].mxu1 }
 0x2a5   :  { %755 = vmatprep.subr.bf16.mxu0 %v2252_v57  ;;  %v830_v3 = vpop.f32.mrb[5].mxu1  ;;  %v2778_v4 = vadd.f32 %v828_v1, %v700_v0 }
 0x2a6   :  { %v2780_v5 = vadd.f32 %v830_v3, %v704_v2  ;;  %v832_v6 = vpop.f32.mrb[6].mxu1 }
 0x2a7   :  { %v833_v7 = vpop.f32.mrb[7].mxu1  ;;  %v837_v8 = vmax.f32 %v2778_v4, 0.0 }
 0x2a8   :  { %756 = vmatpush1.bf16.msra.mxu0 %v2250_v58  ;;  %v838_v9 = vmax.f32 %v2780_v5, 0.0 }
 0x2ab   :  { %2067 = vmatmul.mubr.msk.bf16.vlgmr.msra.gmra.mrb[8].mxu0 %vm749_vm2, %v678_v47 }
 0x376   :  { %v670_v16 = vpop.f32.mrb[4].mxu0 }
 0x377   :  { %v2793_v17 = vadd.f32 %v670_v16, %v549_v14  ;;  %v672_v18 = vpop.f32.mrb[5].mxu0 }
 0x378   :  { %v2795_v19 = vadd.f32 %v672_v18, %v553_v15  ;;  %v674_v20 = vpop.f32.mrb[6].mxu0 }
 0x379   :  { %v675_v21 = vpop.f32.mrb[7].mxu0 }
 0x37e   :  { %v787_v24 = vpop.f32.mrb[8].mxu0 }
 0x37f   :  { %v2799_v25 = vadd.f32 %v787_v24, %v692_v22  ;;  %v789_v26 = vpop.f32.mrb[9].mxu0 }
 0x380   :  { %v790_v27 = vadd.f32 %v789_v26, %v696_v23  ;;  %v791_v28 = vpop.f32.mrb[10].mxu0 }
 0x381   :  { %v835_v29 = vmax.f32 %v2799_v25, 0.0  ;;  %v792_v30 = vpop.f32.mrb[11].mxu0 }
 0x382   :  { %v836_v31 = vmax.f32 %v790_v27, 0.0 }
 0x383   :  { %2421 = dma.done.wait [#allocation7], 16384 }
 0x384   :  { %2422 = vsyncadd [#allocation7], 4294950912  ;;  %v844_v32 = vpack.c.bf16 %v836_v31, %v836_v31  ;;  %v848_v33 = vld [vmem:[#allocation2 + $0x8] sm:$0xff]  ;;  %v850_v34 = vld [vmem:[#allocation2 + $0x18] sm:$0xff] }
 0x385   :  { %v847_v35 = vld [vmem:[#allocation2] sm:$0xff]  ;;  %997 = vmatprep.subr.bf16.mxu0 %v848_v33  ;;  %1079 = vmatprep.subr.bf16.mxu1 %v850_v34  ;;  %v849_v36 = vld [vmem:[#allocation2 + $0x10] sm:$0xff]  ;;  %v852_v37 = vld [vmem:[#allocation2 + $0x28] sm:$0xff] }
 0x386   :  { %1029 = vmatprep.mubr.bf16.mxu0 %v844_v32  ;;  %1111 = vmatprep.mubr.bf16.mxu1 %v844_v32  ;;  %v854_v38 = vld [vmem:[#allocation2 + $0x38] sm:$0xff]  ;;  %v851_v39 = vld [vmem:[#allocation2 + $0x20] sm:$0xff]  ;;  %v853_v40 = vld [vmem:[#allocation2 + $0x30] sm:$0xff] }
 0x387   :  { %998 = vmatpush1.bf16.msra.mxu0 %v847_v35  ;;  %1080 = vmatpush1.bf16.msra.mxu1 %v849_v36  ;;  %v856_v41 = vld [vmem:[#allocation2 + $0x48] sm:$0xff]  ;;  %v858_v42 = vld [vmem:[#allocation2 + $0x58] sm:$0xff]  ;;  %v855_v44 = vld [vmem:[#allocation2 + $0x40] sm:$0xff] }
 0x388   :  { %999 = vmatprep.subr.bf16.mxu0 %v852_v37  ;;  %1081 = vmatprep.subr.bf16.mxu1 %v854_v38  ;;  %v857_v45 = vld [vmem:[#allocation2 + $0x50] sm:$0xff]  ;;  %v860_v46 = vld [vmem:[#allocation2 + $0x68] sm:$0xff]  ;;  %v862_v47 = vld [vmem:[#allocation2 + $0x78] sm:$0xff] }
 0x389   :  { %v859_v48 = vld [vmem:[#allocation2 + $0x60] sm:$0xff]  ;;  %v861_v49 = vld [vmem:[#allocation2 + $0x70] sm:$0xff]  ;;  %v864_v50 = vld [vmem:[#allocation2 + $0x88] sm:$0xff] }
 0x38a   :  { %v866_v51 = vld [vmem:[#allocation2 + $0x98] sm:$0xff]  ;;  %v863_v52 = vld [vmem:[#allocation2 + $0x80] sm:$0xff]  ;;  %v865_v53 = vld [vmem:[#allocation2 + $0x90] sm:$0xff] }
 0x38b   :  { %1000 = vmatpush1.bf16.msra.mxu0 %v851_v39  ;;  %1082 = vmatpush1.bf16.msra.mxu1 %v853_v40  ;;  %v868_v54 = vld [vmem:[#allocation2 + $0xa8] sm:$0xff]  ;;  %v870_v55 = vld [vmem:[#allocation2 + $0xb8] sm:$0xff]  ;;  %v867_v56 = vld [vmem:[#allocation2 + $0xa0] sm:$0xff] }
 0x38c   :  { %1001 = vmatprep.subr.bf16.mxu0 %v856_v41  ;;  %1083 = vmatprep.subr.bf16.mxu1 %v858_v42  ;;  %v869_v57 = vld [vmem:[#allocation2 + $0xb0] sm:$0xff]  ;;  %v872_v58 = vld [vmem:[#allocation2 + $0xc8] sm:$0xff]  ;;  %v874_v59 = vld [vmem:[#allocation2 + $0xd8] sm:$0xff] }
 0x38d   :  { %v871_v60 = vld [vmem:[#allocation2 + $0xc0] sm:$0xff]  ;;  %v873_v61 = vld [vmem:[#allocation2 + $0xd0] sm:$0xff]  ;;  %v876_v0 = vld [vmem:[#allocation2 + $0xe8] sm:$0xff] }
 0x38e   :  { %v878_v1 = vld [vmem:[#allocation2 + $0xf8] sm:$0xff]  ;;  %v875_v2 = vld [vmem:[#allocation2 + $0xe0] sm:$0xff]  ;;  %v877_v3 = vld [vmem:[#allocation2 + $0xf0] sm:$0xff] }
 0x38f   :  { %1002 = vmatpush1.bf16.msra.mxu0 %v855_v44  ;;  %1084 = vmatpush1.bf16.msra.mxu1 %v857_v45  ;;  %v880_v6 = vld [vmem:[#allocation2 + $0x108] sm:$0xff]  ;;  %v882_v7 = vld [vmem:[#allocation2 + $0x118] sm:$0xff]  ;;  %v879_v12 = vld [vmem:[#allocation2 + $0x100] sm:$0xff] }
 0x390   :  { %1003 = vmatprep.subr.bf16.mxu0 %v860_v46  ;;  %1085 = vmatprep.subr.bf16.mxu1 %v862_v47  ;;  %v881_v14 = vld [vmem:[#allocation2 + $0x110] sm:$0xff]  ;;  %v884_v15 = vld [vmem:[#allocation2 + $0x128] sm:$0xff]  ;;  %v886_v16 = vld [vmem:[#allocation2 + $0x138] sm:$0xff] }
 0x391   :  { %v883_v18 = vld [vmem:[#allocation2 + $0x120] sm:$0xff]  ;;  %v885_v20 = vld [vmem:[#allocation2 + $0x130] sm:$0xff]  ;;  %v888_v21 = vld [vmem:[#allocation2 + $0x148] sm:$0xff] }
 0x392   :  { %v890_v22 = vld [vmem:[#allocation2 + $0x158] sm:$0xff]  ;;  %v887_v23 = vld [vmem:[#allocation2 + $0x140] sm:$0xff]  ;;  %v889_v24 = vld [vmem:[#allocation2 + $0x150] sm:$0xff] }
 0x393   :  { %1004 = vmatpush1.bf16.msra.mxu0 %v859_v48  ;;  %1086 = vmatpush1.bf16.msra.mxu1 %v861_v49  ;;  %v892_v26 = vld [vmem:[#allocation2 + $0x168] sm:$0xff]  ;;  %v894_v27 = vld [vmem:[#allocation2 + $0x178] sm:$0xff]  ;;  %v891_v28 = vld [vmem:[#allocation2 + $0x160] sm:$0xff] }
 0x394   :  { %1005 = vmatprep.subr.bf16.mxu0 %v864_v50  ;;  %1087 = vmatprep.subr.bf16.mxu1 %v866_v51  ;;  %v893_v30 = vld [vmem:[#allocation2 + $0x170] sm:$0xff]  ;;  %v896_v31 = vld [vmem:[#allocation2 + $0x188] sm:$0xff]  ;;  %v898_v32 = vld [vmem:[#allocation2 + $0x198] sm:$0xff]  ;;  %v843_v50 = vpack.c.bf16 %v835_v29, %v835_v29 }
 0x395   :  { %v895_v33 = vld [vmem:[#allocation2 + $0x180] sm:$0xff]  ;;  %v897_v34 = vld [vmem:[#allocation2 + $0x190] sm:$0xff]  ;;  %v900_v35 = vld [vmem:[#allocation2 + $0x1a8] sm:$0xff] }
 0x396   :  { %v902_v36 = vld [vmem:[#allocation2 + $0x1b8] sm:$0xff]  ;;  %v899_v37 = vld [vmem:[#allocation2 + $0x1a0] sm:$0xff]  ;;  %v901_v38 = vld [vmem:[#allocation2 + $0x1b0] sm:$0xff] }
 0x397   :  { %1006 = vmatpush1.bf16.msra.mxu0 %v863_v52  ;;  %1088 = vmatpush1.bf16.msra.mxu1 %v865_v53  ;;  %v904_v39 = vld [vmem:[#allocation2 + $0x1c8] sm:$0xff]  ;;  %v906_v40 = vld [vmem:[#allocation2 + $0x1d8] sm:$0xff]  ;;  %v903_v41 = vld [vmem:[#allocation2 + $0x1c0] sm:$0xff] }
 0x398   :  { %1007 = vmatprep.subr.bf16.mxu0 %v868_v54  ;;  %1089 = vmatprep.subr.bf16.mxu1 %v870_v55  ;;  %v905_v42 = vld [vmem:[#allocation2 + $0x1d0] sm:$0xff]  ;;  %v908_v44 = vld [vmem:[#allocation2 + $0x1e8] sm:$0xff]  ;;  %v910_v45 = vld [vmem:[#allocation2 + $0x1f8] sm:$0xff]  ;;  %v846_v55 = vpack.c.bf16 %v838_v9, %v838_v9 }
 0x399   :  { %v907_v46 = vld [vmem:[#allocation2 + $0x1e0] sm:$0xff]  ;;  %v909_v47 = vld [vmem:[#allocation2 + $0x1f0] sm:$0xff]  ;;  %v912_v48 = vld [vmem:[#allocation2 + $0x208] sm:$0xff] }
 0x39a   :  { %v914_v49 = vld [vmem:[#allocation2 + $0x218] sm:$0xff]  ;;  %v911_v51 = vld [vmem:[#allocation2 + $0x200] sm:$0xff]  ;;  %v913_v52 = vld [vmem:[#allocation2 + $0x210] sm:$0xff] }
 0x39b   :  { %1008 = vmatpush1.bf16.msra.mxu0 %v867_v56  ;;  %1090 = vmatpush1.bf16.msra.mxu1 %v869_v57  ;;  %v916_v53 = vld [vmem:[#allocation2 + $0x228] sm:$0xff]  ;;  %v918_v54 = vld [vmem:[#allocation2 + $0x238] sm:$0xff]  ;;  %v915_v25 = vld [vmem:[#allocation2 + $0x220] sm:$0xff] }
 0x39c   :  { %1009 = vmatprep.subr.bf16.mxu0 %v872_v58  ;;  %1091 = vmatprep.subr.bf16.mxu1 %v874_v59  ;;  %v917_v29 = vld [vmem:[#allocation2 + $0x230] sm:$0xff]  ;;  %v920_v56 = vld [vmem:[#allocation2 + $0x248] sm:$0xff]  ;;  %v922_v57 = vld [vmem:[#allocation2 + $0x258] sm:$0xff] }
 0x39d   :  { %v919_v58 = vld [vmem:[#allocation2 + $0x240] sm:$0xff]  ;;  %v921_v5 = vld [vmem:[#allocation2 + $0x250] sm:$0xff]  ;;  %v924_v59 = vld [vmem:[#allocation2 + $0x268] sm:$0xff] }
 0x39e   :  { %v926_v9 = vld [vmem:[#allocation2 + $0x278] sm:$0xff] }
 0x39f   :  { %1010 = vmatpush1.bf16.msra.mxu0 %v871_v60  ;;  %1092 = vmatpush1.bf16.msra.mxu1 %v873_v61  ;;  %v923_v60 = vld [vmem:[#allocation2 + $0x260] sm:$0xff]  ;;  %v925_v61 = vld [vmem:[#allocation2 + $0x270] sm:$0xff] }
 0x3a0   :  { %1011 = vmatprep.subr.bf16.mxu0 %v876_v0  ;;  %1093 = vmatprep.subr.bf16.mxu1 %v878_v1  ;;  %v928_v0 = vld [vmem:[#allocation2 + $0x288] sm:$0xff]  ;;  %v930_v1 = vld [vmem:[#allocation2 + $0x298] sm:$0xff] }
 0x3a3   :  { %1012 = vmatpush1.bf16.msra.mxu0 %v875_v2  ;;  %1094 = vmatpush1.bf16.msra.mxu1 %v877_v3  ;;  %v927_v2 = vld [vmem:[#allocation2 + $0x280] sm:$0xff]  ;;  %v929_v3 = vld [vmem:[#allocation2 + $0x290] sm:$0xff] }
 0x3a4   :  { %1013 = vmatprep.subr.bf16.mxu0 %v880_v6  ;;  %1095 = vmatprep.subr.bf16.mxu1 %v882_v7  ;;  %v932_v6 = vld [vmem:[#allocation2 + $0x2a8] sm:$0xff]  ;;  %v934_v7 = vld [vmem:[#allocation2 + $0x2b8] sm:$0xff] }
 0x3a7   :  { %1014 = vmatpush1.bf16.msra.mxu0 %v879_v12  ;;  %1096 = vmatpush1.bf16.msra.mxu1 %v881_v14  ;;  %v931_v12 = vld [vmem:[#allocation2 + $0x2a0] sm:$0xff]  ;;  %v933_v14 = vld [vmem:[#allocation2 + $0x2b0] sm:$0xff] }
 0x3a8   :  { %1015 = vmatprep.subr.bf16.mxu0 %v884_v15  ;;  %1097 = vmatprep.subr.bf16.mxu1 %v886_v16  ;;  %v936_v15 = vld [vmem:[#allocation2 + $0x2c8] sm:$0xff]  ;;  %v938_v16 = vld [vmem:[#allocation2 + $0x2d8] sm:$0xff] }
 0x3ab   :  { %1016 = vmatpush1.bf16.msra.mxu0 %v883_v18  ;;  %1098 = vmatpush1.bf16.msra.mxu1 %v885_v20  ;;  %v935_v18 = vld [vmem:[#allocation2 + $0x2c0] sm:$0xff]  ;;  %v937_v20 = vld [vmem:[#allocation2 + $0x2d0] sm:$0xff] }
 0x3ac   :  { %1017 = vmatprep.subr.bf16.mxu0 %v888_v21  ;;  %1099 = vmatprep.subr.bf16.mxu1 %v890_v22  ;;  %v940_v21 = vld [vmem:[#allocation2 + $0x2e8] sm:$0xff]  ;;  %v942_v22 = vld [vmem:[#allocation2 + $0x2f8] sm:$0xff] }
 0x3af   :  { %1018 = vmatpush1.bf16.msra.mxu0 %v887_v23  ;;  %1100 = vmatpush1.bf16.msra.mxu1 %v889_v24  ;;  %v939_v23 = vld [vmem:[#allocation2 + $0x2e0] sm:$0xff]  ;;  %v941_v24 = vld [vmem:[#allocation2 + $0x2f0] sm:$0xff] }
 0x3b0   :  { %1019 = vmatprep.subr.bf16.mxu0 %v892_v26  ;;  %1101 = vmatprep.subr.bf16.mxu1 %v894_v27  ;;  %v944_v26 = vld [vmem:[#allocation2 + $0x308] sm:$0xff]  ;;  %v946_v27 = vld [vmem:[#allocation2 + $0x318] sm:$0xff] }
 0x3b3   :  { %1020 = vmatpush1.bf16.msra.mxu0 %v891_v28  ;;  %1102 = vmatpush1.bf16.msra.mxu1 %v893_v30  ;;  %v943_v28 = vld [vmem:[#allocation2 + $0x300] sm:$0xff]  ;;  %v945_v30 = vld [vmem:[#allocation2 + $0x310] sm:$0xff] }
 0x3b4   :  { %1021 = vmatprep.subr.bf16.mxu0 %v896_v31  ;;  %1103 = vmatprep.subr.bf16.mxu1 %v898_v32  ;;  %v948_v31 = vld [vmem:[#allocation2 + $0x328] sm:$0xff]  ;;  %v950_v32 = vld [vmem:[#allocation2 + $0x338] sm:$0xff] }
 0x3b7   :  { %1022 = vmatpush1.bf16.msra.mxu0 %v895_v33  ;;  %1104 = vmatpush1.bf16.msra.mxu1 %v897_v34  ;;  %v947_v33 = vld [vmem:[#allocation2 + $0x320] sm:$0xff]  ;;  %v949_v34 = vld [vmem:[#allocation2 + $0x330] sm:$0xff] }
 0x3b8   :  { %1023 = vmatprep.subr.bf16.mxu0 %v900_v35  ;;  %1105 = vmatprep.subr.bf16.mxu1 %v902_v36  ;;  %v952_v35 = vld [vmem:[#allocation2 + $0x348] sm:$0xff]  ;;  %v954_v36 = vld [vmem:[#allocation2 + $0x358] sm:$0xff] }
 0x3bb   :  { %1024 = vmatpush1.bf16.msra.mxu0 %v899_v37  ;;  %1106 = vmatpush1.bf16.msra.mxu1 %v901_v38  ;;  %v951_v37 = vld [vmem:[#allocation2 + $0x340] sm:$0xff]  ;;  %v953_v38 = vld [vmem:[#allocation2 + $0x350] sm:$0xff] }
 0x3bc   :  { %1025 = vmatprep.subr.bf16.mxu0 %v904_v39  ;;  %1107 = vmatprep.subr.bf16.mxu1 %v906_v40  ;;  %v956_v39 = vld [vmem:[#allocation2 + $0x368] sm:$0xff]  ;;  %v958_v40 = vld [vmem:[#allocation2 + $0x378] sm:$0xff] }
 0x3bf   :  { %1026 = vmatpush1.bf16.msra.mxu0 %v903_v41  ;;  %1108 = vmatpush1.bf16.msra.mxu1 %v905_v42  ;;  %v955_v41 = vld [vmem:[#allocation2 + $0x360] sm:$0xff]  ;;  %v957_v42 = vld [vmem:[#allocation2 + $0x370] sm:$0xff] }
 0x3c0   :  { %1027 = vmatprep.subr.bf16.mxu0 %v908_v44  ;;  %1109 = vmatprep.subr.bf16.mxu1 %v910_v45  ;;  %v960_v44 = vld [vmem:[#allocation2 + $0x388] sm:$0xff]  ;;  %v962_v45 = vld [vmem:[#allocation2 + $0x398] sm:$0xff] }
 0x3c3   :  { %1028 = vmatpush1.bf16.msra.mxu0 %v907_v46  ;;  %1110 = vmatpush1.bf16.msra.mxu1 %v909_v47  ;;  %v959_v46 = vld [vmem:[#allocation2 + $0x380] sm:$0xff]  ;;  %v961_v47 = vld [vmem:[#allocation2 + $0x390] sm:$0xff] }
 0x3c4   :  { %1038 = vmatprep.subr.bf16.mxu0 %v912_v48  ;;  %1120 = vmatprep.subr.bf16.mxu1 %v914_v49  ;;  %v964_v48 = vld [vmem:[#allocation2 + $0x3a8] sm:$0xff]  ;;  %v966_v49 = vld [vmem:[#allocation2 + $0x3b8] sm:$0xff] }
 0x3c6   :  { %1030 = vmatmul.mubr.bf16.vlgmr.msra.gmra.mrb[12].mxu0 %v843_v50  ;;  %1112 = vmatmul.mubr.bf16.vlgmr.msra.gmra.mrb[8].mxu1 %v843_v50  ;;  %v963_v50 = vld [vmem:[#allocation2 + $0x3a0] sm:$0xff] }
 0x3c7   :  { %1039 = vmatpush1.bf16.msra.mxu0 %v911_v51  ;;  %1121 = vmatpush1.bf16.msra.mxu1 %v913_v52  ;;  %v965_v51 = vld [vmem:[#allocation2 + $0x3b0] sm:$0xff]  ;;  %v968_v52 = vld [vmem:[#allocation2 + $0x3c8] sm:$0xff] }
 0x3c8   :  { %1040 = vmatprep.subr.bf16.mxu0 %v916_v53  ;;  %1122 = vmatprep.subr.bf16.mxu1 %v918_v54  ;;  %v970_v53 = vld [vmem:[#allocation2 + $0x3d8] sm:$0xff]  ;;  %v967_v54 = vld [vmem:[#allocation2 + $0x3c0] sm:$0xff] }
 0x3c9   :  { %1070 = vmatprep.mubr.bf16.mxu0 %v846_v55  ;;  %1152 = vmatprep.mubr.bf16.mxu1 %v846_v55  ;;  %v969_v55 = vld [vmem:[#allocation2 + $0x3d0] sm:$0xff] }
 0x3cb   :  { %1041 = vmatpush1.bf16.msra.mxu0 %v915_v25  ;;  %1123 = vmatpush1.bf16.msra.mxu1 %v917_v29  ;;  %v972_v25 = vld [vmem:[#allocation2 + $0x3e8] sm:$0xff]  ;;  %v974_v29 = vld [vmem:[#allocation2 + $0x3f8] sm:$0xff] }
 0x3cc   :  { %1042 = vmatprep.subr.bf16.mxu0 %v920_v56  ;;  %1124 = vmatprep.subr.bf16.mxu1 %v922_v57  ;;  %v971_v56 = vld [vmem:[#allocation2 + $0x3e0] sm:$0xff]  ;;  %v973_v57 = vld [vmem:[#allocation2 + $0x3f0] sm:$0xff] }
 0x3cf   :  { %1043 = vmatpush1.bf16.msra.mxu0 %v919_v58  ;;  %1125 = vmatpush1.bf16.msra.mxu1 %v921_v5  ;;  %v845_v58 = vpack.c.bf16 %v837_v8, %v837_v8  ;;  %v975_v5 = vld [vmem:[%s2932_s10] sm:$0xf] }
 0x3d0   :  { %1044 = vmatprep.subr.bf16.mxu0 %v924_v59  ;;  %1126 = vmatprep.subr.bf16.mxu1 %v926_v9  ;;  %v980_v59 = vrot.slane %v975_v5, %v2784_v11  ;;  %v988_v9 = vrot.slane %v975_v5, %v2772_v62 }
 0x3d3   :  { %1045 = vmatpush1.bf16.msra.mxu0 %v923_v60  ;;  %1127 = vmatpush1.bf16.msra.mxu1 %v925_v61  ;;  %v984_v60 = vrot.slane %v975_v5, %v2789_v13  ;;  %v992_v61 = vrot.slane %v975_v5, %v2774_v63 }
 0x3d4   :  { %1046 = vmatprep.subr.bf16.mxu0 %v928_v0  ;;  %1128 = vmatprep.subr.bf16.mxu1 %v930_v1 }
 0x3d7   :  { %1047 = vmatpush1.bf16.msra.mxu0 %v927_v2  ;;  %1129 = vmatpush1.bf16.msra.mxu1 %v929_v3 }
 0x3d8   :  { %1048 = vmatprep.subr.bf16.mxu0 %v932_v6  ;;  %1130 = vmatprep.subr.bf16.mxu1 %v934_v7 }
 0x3db   :  { %1049 = vmatpush1.bf16.msra.mxu0 %v931_v12  ;;  %1131 = vmatpush1.bf16.msra.mxu1 %v933_v14 }
 0x3dc   :  { %1050 = vmatprep.subr.bf16.mxu0 %v936_v15  ;;  %1132 = vmatprep.subr.bf16.mxu1 %v938_v16 }
 0x3df   :  { %1051 = vmatpush1.bf16.msra.mxu0 %v935_v18  ;;  %1133 = vmatpush1.bf16.msra.mxu1 %v937_v20 }
 0x3e0   :  { %1052 = vmatprep.subr.bf16.mxu0 %v940_v21  ;;  %1134 = vmatprep.subr.bf16.mxu1 %v942_v22 }
 0x3e3   :  { %1053 = vmatpush1.bf16.msra.mxu0 %v939_v23  ;;  %1135 = vmatpush1.bf16.msra.mxu1 %v941_v24 }
 0x3e4   :  { %1054 = vmatprep.subr.bf16.mxu0 %v944_v26  ;;  %1136 = vmatprep.subr.bf16.mxu1 %v946_v27 }
 0x3e7   :  { %1055 = vmatpush1.bf16.msra.mxu0 %v943_v28  ;;  %1137 = vmatpush1.bf16.msra.mxu1 %v945_v30 }
 0x3e8   :  { %1056 = vmatprep.subr.bf16.mxu0 %v948_v31  ;;  %1138 = vmatprep.subr.bf16.mxu1 %v950_v32 }
 0x3eb   :  { %1057 = vmatpush1.bf16.msra.mxu0 %v947_v33  ;;  %1139 = vmatpush1.bf16.msra.mxu1 %v949_v34 }
 0x3ec   :  { %1058 = vmatprep.subr.bf16.mxu0 %v952_v35  ;;  %1140 = vmatprep.subr.bf16.mxu1 %v954_v36 }
 0x3ef   :  { %1059 = vmatpush1.bf16.msra.mxu0 %v951_v37  ;;  %1141 = vmatpush1.bf16.msra.mxu1 %v953_v38 }
 0x3f0   :  { %1060 = vmatprep.subr.bf16.mxu0 %v956_v39  ;;  %1142 = vmatprep.subr.bf16.mxu1 %v958_v40 }
 0x3f3   :  { %1061 = vmatpush1.bf16.msra.mxu0 %v955_v41  ;;  %1143 = vmatpush1.bf16.msra.mxu1 %v957_v42 }
 0x3f4   :  { %1062 = vmatprep.subr.bf16.mxu0 %v960_v44  ;;  %1144 = vmatprep.subr.bf16.mxu1 %v962_v45 }
 0x3f7   :  { %1063 = vmatpush1.bf16.msra.mxu0 %v959_v46  ;;  %1145 = vmatpush1.bf16.msra.mxu1 %v961_v47 }
 0x3f8   :  { %1064 = vmatprep.subr.bf16.mxu0 %v964_v48  ;;  %1146 = vmatprep.subr.bf16.mxu1 %v966_v49 }
 0x3fb   :  { %1065 = vmatpush1.bf16.msra.mxu0 %v963_v50  ;;  %1147 = vmatpush1.bf16.msra.mxu1 %v965_v51 }
 0x3fc   :  { %1066 = vmatprep.subr.bf16.mxu0 %v968_v52  ;;  %1148 = vmatprep.subr.bf16.mxu1 %v970_v53 }
 0x3ff   :  { %1067 = vmatpush1.bf16.msra.mxu0 %v967_v54  ;;  %1149 = vmatpush1.bf16.msra.mxu1 %v969_v55 }
 0x400   :  { %1068 = vmatprep.subr.bf16.mxu0 %v972_v25  ;;  %1150 = vmatprep.subr.bf16.mxu1 %v974_v29 }
 0x403   :  { %1069 = vmatpush1.bf16.msra.mxu0 %v971_v56  ;;  %1151 = vmatpush1.bf16.msra.mxu1 %v973_v57 }
 0x406   :  { %1071 = vmatmul.mubr.bf16.vlgmr.msra.gmra.mrb[12].mxu0 %v845_v58  ;;  %1153 = vmatmul.mubr.bf16.vlgmr.msra.gmra.mrb[8].mxu1 %v845_v58 }
 0x4d9   :  { %v1072_v0 = vpop.f32.mrb[12].mxu0  ;;  %v1154_v4 = vpop.f32.mrb[8].mxu1 }
 0x4da   :  { %v2818_v1 = vadd.f32 %v1072_v0, %v980_v59  ;;  %v2820_v8 = vadd.f32 %v1154_v4, %v988_v9  ;;  %v1074_v2 = vpop.f32.mrb[13].mxu0  ;;  %v1156_v3 = vpop.f32.mrb[9].mxu1 }
 0x4db   :  { %v2128_v6 = vadd.f32 %v1074_v2, %v984_v60  ;;  %v2822_v7 = vadd.f32 %v1156_v3, %v992_v61  ;;  %v1076_v12 = vpop.f32.mrb[14].mxu0  ;;  %v1158_v14 = vpop.f32.mrb[10].mxu1 }
 0x4dc   :  { %v1161_v15 = vmax.f32 %v2818_v1, 0.0  ;;  %v1163_v16 = vmax.f32 %v2820_v8, 0.0  ;;  %v1077_v18 = vpop.f32.mrb[15].mxu0  ;;  %v1159_v20 = vpop.f32.mrb[11].mxu1 }
 0x4dd   :  { %v1162_v21 = vmax.f32 %v2128_v6, 0.0  ;;  %v1164_v22 = vmax.f32 %v2822_v7, 0.0 }
 0x4de   :  { %2423 = dma.done.wait [#allocation7 + $0x1], 8192 }
 0x4df   :  { %2424 = vsyncadd [#allocation7 + $0x1], 4294959104  ;;  %v1169_v23 = vpack.c.bf16 %v1162_v21, %v1162_v21  ;;  %v1173_v24 = vld [vmem:[#allocation3 + $0x8] sm:$0xff]  ;;  %v1172_v26 = vld [vmem:[#allocation3] sm:$0xff]  ;;  %v1168_v58 = vpack.c.bf16 %v1161_v15, %v1161_v15  ;;  %v1171_v5 = vpack.c.bf16 %v1164_v22, %v1164_v22 }
 0x4e0   :  { %v1175_v27 = vld [vmem:[#allocation3 + $0x18] sm:$0xff]  ;;  %1248 = vmatprep.subr.bf16.mxu0 %v1173_v24  ;;  %v1174_v28 = vld [vmem:[#allocation3 + $0x10] sm:$0xff]  ;;  %v1177_v30 = vld [vmem:[#allocation3 + $0x28] sm:$0xff] }
 0x4e1   :  { %1280 = vmatprep.mubr.bf16.mxu0 %v1169_v23  ;;  %1249 = vmatpush1.bf16.msra.mxu0 %v1172_v26  ;;  %v1176_v31 = vld [vmem:[#allocation3 + $0x20] sm:$0xff]  ;;  %v1179_v32 = vld [vmem:[#allocation3 + $0x38] sm:$0xff]  ;;  %v1178_v33 = vld [vmem:[#allocation3 + $0x30] sm:$0xff] }
 0x4e2   :  { %1250 = vmatprep.subr.bf16.mxu0 %v1175_v27  ;;  %v1181_v34 = vld [vmem:[#allocation3 + $0x48] sm:$0xff]  ;;  %v1180_v35 = vld [vmem:[#allocation3 + $0x40] sm:$0xff]  ;;  %v1183_v36 = vld [vmem:[#allocation3 + $0x58] sm:$0xff] }
 0x4e3   :  { %v1182_v37 = vld [vmem:[#allocation3 + $0x50] sm:$0xff]  ;;  %v1185_v38 = vld [vmem:[#allocation3 + $0x68] sm:$0xff]  ;;  %v1184_v39 = vld [vmem:[#allocation3 + $0x60] sm:$0xff] }
 0x4e4   :  { %v1187_v40 = vld [vmem:[#allocation3 + $0x78] sm:$0xff]  ;;  %v1186_v41 = vld [vmem:[#allocation3 + $0x70] sm:$0xff]  ;;  %v1189_v42 = vld [vmem:[#allocation3 + $0x88] sm:$0xff] }
 0x4e5   :  { %1251 = vmatpush1.bf16.msra.mxu0 %v1174_v28  ;;  %v1188_v44 = vld [vmem:[#allocation3 + $0x80] sm:$0xff]  ;;  %v1191_v45 = vld [vmem:[#allocation3 + $0x98] sm:$0xff]  ;;  %v1190_v46 = vld [vmem:[#allocation3 + $0x90] sm:$0xff] }
 0x4e6   :  { %1252 = vmatprep.subr.bf16.mxu0 %v1177_v30  ;;  %v1193_v47 = vld [vmem:[#allocation3 + $0xa8] sm:$0xff]  ;;  %v1192_v48 = vld [vmem:[#allocation3 + $0xa0] sm:$0xff]  ;;  %v1195_v49 = vld [vmem:[#allocation3 + $0xb8] sm:$0xff] }
 0x4e7   :  { %v1194_v50 = vld [vmem:[#allocation3 + $0xb0] sm:$0xff]  ;;  %v1197_v51 = vld [vmem:[#allocation3 + $0xc8] sm:$0xff]  ;;  %v1196_v52 = vld [vmem:[#allocation3 + $0xc0] sm:$0xff] }
 0x4e8   :  { %v1199_v53 = vld [vmem:[#allocation3 + $0xd8] sm:$0xff]  ;;  %v1198_v54 = vld [vmem:[#allocation3 + $0xd0] sm:$0xff]  ;;  %v1201_v55 = vld [vmem:[#allocation3 + $0xe8] sm:$0xff] }
 0x4e9   :  { %1253 = vmatpush1.bf16.msra.mxu0 %v1176_v31  ;;  %v1200_v25 = vld [vmem:[#allocation3 + $0xe0] sm:$0xff]  ;;  %v1203_v29 = vld [vmem:[#allocation3 + $0xf8] sm:$0xff]  ;;  %v1202_v56 = vld [vmem:[#allocation3 + $0xf0] sm:$0xff] }
 0x4ea   :  { %1254 = vmatprep.subr.bf16.mxu0 %v1179_v32  ;;  %v1205_v57 = vld [vmem:[#allocation3 + $0x108] sm:$0xff]  ;;  %v1204_v59 = vld [vmem:[#allocation3 + $0x100] sm:$0xff]  ;;  %v1207_v9 = vld [vmem:[#allocation3 + $0x118] sm:$0xff] }
 0x4eb   :  { %v1206_v60 = vld [vmem:[#allocation3 + $0x110] sm:$0xff]  ;;  %v1209_v61 = vld [vmem:[#allocation3 + $0x128] sm:$0xff]  ;;  %v1208_v0 = vld [vmem:[#allocation3 + $0x120] sm:$0xff] }
 0x4ec   :  { %v1211_v4 = vld [vmem:[#allocation3 + $0x138] sm:$0xff]  ;;  %v1210_v1 = vld [vmem:[#allocation3 + $0x130] sm:$0xff]  ;;  %v1213_v2 = vld [vmem:[#allocation3 + $0x148] sm:$0xff] }
 0x4ed   :  { %1255 = vmatpush1.bf16.msra.mxu0 %v1178_v33  ;;  %v1212_v3 = vld [vmem:[#allocation3 + $0x140] sm:$0xff]  ;;  %v1215_v6 = vld [vmem:[#allocation3 + $0x158] sm:$0xff]  ;;  %v1214_v7 = vld [vmem:[#allocation3 + $0x150] sm:$0xff] }
 0x4ee   :  { %1256 = vmatprep.subr.bf16.mxu0 %v1181_v34  ;;  %v1217_v12 = vld [vmem:[#allocation3 + $0x168] sm:$0xff]  ;;  %v1216_v14 = vld [vmem:[#allocation3 + $0x160] sm:$0xff]  ;;  %v1219_v15 = vld [vmem:[#allocation3 + $0x178] sm:$0xff] }
 0x4ef   :  { %v1218_v18 = vld [vmem:[#allocation3 + $0x170] sm:$0xff]  ;;  %v1221_v20 = vld [vmem:[#allocation3 + $0x188] sm:$0xff]  ;;  %v1220_v21 = vld [vmem:[#allocation3 + $0x180] sm:$0xff] }
 0x4f0   :  { %v1223_v22 = vld [vmem:[#allocation3 + $0x198] sm:$0xff]  ;;  %v1222_v23 = vld [vmem:[#allocation3 + $0x190] sm:$0xff]  ;;  %v1225_v24 = vld [vmem:[#allocation3 + $0x1a8] sm:$0xff] }
 0x4f1   :  { %1257 = vmatpush1.bf16.msra.mxu0 %v1180_v35  ;;  %v1224_v26 = vld [vmem:[#allocation3 + $0x1a0] sm:$0xff]  ;;  %v1227_v27 = vld [vmem:[#allocation3 + $0x1b8] sm:$0xff]  ;;  %v1226_v28 = vld [vmem:[#allocation3 + $0x1b0] sm:$0xff] }
 0x4f2   :  { %1258 = vmatprep.subr.bf16.mxu0 %v1183_v36  ;;  %v1229_v30 = vld [vmem:[#allocation3 + $0x1c8] sm:$0xff]  ;;  %v1228_v31 = vld [vmem:[#allocation3 + $0x1c0] sm:$0xff]  ;;  %v1231_v32 = vld [vmem:[#allocation3 + $0x1d8] sm:$0xff] }
 0x4f3   :  { %v1230_v33 = vld [vmem:[#allocation3 + $0x1d0] sm:$0xff]  ;;  %v1233_v34 = vld [vmem:[#allocation3 + $0x1e8] sm:$0xff]  ;;  %v1232_v35 = vld [vmem:[#allocation3 + $0x1e0] sm:$0xff] }
 0x4f4   :  { %v1235_v36 = vld [vmem:[#allocation3 + $0x1f8] sm:$0xff] }
 0x4f5   :  { %1259 = vmatpush1.bf16.msra.mxu0 %v1182_v37  ;;  %v1234_v37 = vld [vmem:[#allocation3 + $0x1f0] sm:$0xff] }
 0x4f6   :  { %1260 = vmatprep.subr.bf16.mxu0 %v1185_v38  ;;  %v1170_v38 = vpack.c.bf16 %v1163_v16, %v1163_v16 }
 0x4f9   :  { %1261 = vmatpush1.bf16.msra.mxu0 %v1184_v39  ;;  %v1236_v39 = vld [vmem:[%s2933_s11] sm:$0x3] }
 0x4fa   :  { %1262 = vmatprep.subr.bf16.mxu0 %v1187_v40  ;;  %v1241_v40 = vrot.slane %v1236_v39, %v2784_v11 }
 0x4fd   :  { %1263 = vmatpush1.bf16.msra.mxu0 %v1186_v41  ;;  %v1245_v41 = vrot.slane %v1236_v39, %v2789_v13 }
 0x4fe   :  { %1264 = vmatprep.subr.bf16.mxu0 %v1189_v42 }
 0x501   :  { %1265 = vmatpush1.bf16.msra.mxu0 %v1188_v44 }
 0x502   :  { %1266 = vmatprep.subr.bf16.mxu0 %v1191_v45 }
 0x505   :  { %1267 = vmatpush1.bf16.msra.mxu0 %v1190_v46 }
 0x506   :  { %1268 = vmatprep.subr.bf16.mxu0 %v1193_v47 }
 0x509   :  { %1269 = vmatpush1.bf16.msra.mxu0 %v1192_v48 }
 0x50a   :  { %1270 = vmatprep.subr.bf16.mxu0 %v1195_v49 }
 0x50d   :  { %1271 = vmatpush1.bf16.msra.mxu0 %v1194_v50 }
 0x50e   :  { %1272 = vmatprep.subr.bf16.mxu0 %v1197_v51 }
 0x511   :  { %1273 = vmatpush1.bf16.msra.mxu0 %v1196_v52 }
 0x512   :  { %1274 = vmatprep.subr.bf16.mxu0 %v1199_v53 }
 0x515   :  { %1275 = vmatpush1.bf16.msra.mxu0 %v1198_v54 }
 0x516   :  { %1276 = vmatprep.subr.bf16.mxu0 %v1201_v55 }
 0x519   :  { %1277 = vmatpush1.bf16.msra.mxu0 %v1200_v25 }
 0x51a   :  { %1278 = vmatprep.subr.bf16.mxu0 %v1203_v29 }
 0x51d   :  { %1279 = vmatpush1.bf16.msra.mxu0 %v1202_v56 }
 0x51e   :  { %1289 = vmatprep.subr.bf16.mxu0 %v1205_v57 }
 0x520   :  { %1281 = vmatmul.mubr.bf16.vlgmr.msra.gmra.mrb[16].mxu0 %v1168_v58 }
 0x521   :  { %1290 = vmatpush1.bf16.msra.mxu0 %v1204_v59  ;;  %1321 = vmatprep.mubr.bf16.mxu0 %v1171_v5 }
 0x522   :  { %1291 = vmatprep.subr.bf16.mxu0 %v1207_v9 }
 0x525   :  { %1292 = vmatpush1.bf16.msra.mxu0 %v1206_v60 }
 0x526   :  { %1293 = vmatprep.subr.bf16.mxu0 %v1209_v61 }
 0x529   :  { %1294 = vmatpush1.bf16.msra.mxu0 %v1208_v0 }
 0x52a   :  { %1295 = vmatprep.subr.bf16.mxu0 %v1211_v4 }
 0x52d   :  { %1296 = vmatpush1.bf16.msra.mxu0 %v1210_v1 }
 0x52e   :  { %1297 = vmatprep.subr.bf16.mxu0 %v1213_v2 }
 0x531   :  { %1298 = vmatpush1.bf16.msra.mxu0 %v1212_v3 }
 0x532   :  { %1299 = vmatprep.subr.bf16.mxu0 %v1215_v6 }
 0x535   :  { %1300 = vmatpush1.bf16.msra.mxu0 %v1214_v7 }
 0x536   :  { %1301 = vmatprep.subr.bf16.mxu0 %v1217_v12 }
 0x539   :  { %1302 = vmatpush1.bf16.msra.mxu0 %v1216_v14 }
 0x53a   :  { %1303 = vmatprep.subr.bf16.mxu0 %v1219_v15 }
 0x53d   :  { %1304 = vmatpush1.bf16.msra.mxu0 %v1218_v18 }
 0x53e   :  { %1305 = vmatprep.subr.bf16.mxu0 %v1221_v20 }
 0x541   :  { %1306 = vmatpush1.bf16.msra.mxu0 %v1220_v21 }
 0x542   :  { %1307 = vmatprep.subr.bf16.mxu0 %v1223_v22 }
 0x545   :  { %1308 = vmatpush1.bf16.msra.mxu0 %v1222_v23 }
 0x546   :  { %1309 = vmatprep.subr.bf16.mxu0 %v1225_v24 }
 0x549   :  { %1310 = vmatpush1.bf16.msra.mxu0 %v1224_v26 }
 0x54a   :  { %1311 = vmatprep.subr.bf16.mxu0 %v1227_v27 }
 0x54d   :  { %1312 = vmatpush1.bf16.msra.mxu0 %v1226_v28 }
 0x54e   :  { %1313 = vmatprep.subr.bf16.mxu0 %v1229_v30 }
 0x551   :  { %1314 = vmatpush1.bf16.msra.mxu0 %v1228_v31 }
 0x552   :  { %1315 = vmatprep.subr.bf16.mxu0 %v1231_v32 }
 0x555   :  { %1316 = vmatpush1.bf16.msra.mxu0 %v1230_v33 }
 0x556   :  { %1317 = vmatprep.subr.bf16.mxu0 %v1233_v34 }
 0x559   :  { %1318 = vmatpush1.bf16.msra.mxu0 %v1232_v35 }
 0x55a   :  { %1319 = vmatprep.subr.bf16.mxu0 %v1235_v36 }
 0x55d   :  { %1320 = vmatpush1.bf16.msra.mxu0 %v1234_v37 }
 0x560   :  { %1322 = vmatmul.mubr.bf16.vlgmr.msra.gmra.mrb[16].mxu0 %v1170_v38 }
 0x633   :  { %v1323_v42 = vpop.f32.mrb[16].mxu0 }
 0x634   :  { %v2841_v44 = vadd.f32 %v1323_v42, %v1241_v40  ;;  %v1325_v45 = vpop.f32.mrb[17].mxu0 }
 0x635   :  { %v2843_v46 = vadd.f32 %v1325_v45, %v1245_v41  ;;  %v1327_v47 = vpop.f32.mrb[18].mxu0 }
 0x636   :  { %v1328_v8 = vpop.f32.mrb[19].mxu0 }
 0x637   :  { %2425 = dma.done.wait [#allocation7 + $0x2], 8192 }
 0x638   :  { %2426 = vsyncadd [#allocation7 + $0x2], 4294959104 }
 0x639   :  { %2427 = dma.done.wait [#allocation7 + $0x3], 8192 }
 0x63a   :  { %2428 = vsyncadd [#allocation7 + $0x3], 4294959104  ;;  %v2847_v16 = vpack.c.bf16 %v2795_v19, %v2795_v19  ;;  %v1340_v48 = vld [vmem:[#allocation4 + $0x8] sm:$0xff]  ;;  %v1339_v49 = vld [vmem:[#allocation4] sm:$0xff]  ;;  %s2464_s11 = smov 80   ;;  %v2853_v22 = vpack.c.bf16 %v2793_v17, %v2793_v17  ;;  %vm1689_vm3 = vcmask 130048  }
 0x63b   :  { %v1344_v50 = vld [vmem:[#allocation4 + $0x28] sm:$0xff]  ;;  %1403 = vmatprep.subr.bf16.mxu1 %v1340_v48  ;;  %v1343_v51 = vld [vmem:[#allocation4 + $0x20] sm:$0xff]  ;;  %1667 = vrot.lane.b32.xlu0 %v2753_v10, %s2464_s11  ;;  %v1342_v21 = vld [vmem:[#allocation4 + $0x18] sm:$0xff] }
 0x63c   :  { %1435 = vmatprep.mubr.bf16.mxu1 %v2847_v16  ;;  %1404 = vmatpush1.bf16.msra.mxu1 %v1339_v49  ;;  %v1348_v52 = vld [vmem:[#allocation4 + $0x48] sm:$0xff]  ;;  %v1347_v53 = vld [vmem:[#allocation4 + $0x40] sm:$0xff]  ;;  %v1341_v23 = vld [vmem:[#allocation4 + $0x10] sm:$0xff] }
 0x63d   :  { %1405 = vmatprep.subr.bf16.mxu1 %v1344_v50  ;;  %v1352_v54 = vld [vmem:[#allocation4 + $0x68] sm:$0xff]  ;;  %v1351_v55 = vld [vmem:[#allocation4 + $0x60] sm:$0xff]  ;;  %v1346_v24 = vld [vmem:[#allocation4 + $0x38] sm:$0xff] }
 0x63e   :  { %v1356_v25 = vld [vmem:[#allocation4 + $0x88] sm:$0xff]  ;;  %v1355_v19 = vld [vmem:[#allocation4 + $0x80] sm:$0xff]  ;;  %v1345_v26 = vld [vmem:[#allocation4 + $0x30] sm:$0xff] }
 0x63f   :  { %v1360_v29 = vld [vmem:[#allocation4 + $0xa8] sm:$0xff]  ;;  %v1359_v56 = vld [vmem:[#allocation4 + $0xa0] sm:$0xff]  ;;  %v1350_v27 = vld [vmem:[#allocation4 + $0x58] sm:$0xff] }
 0x640   :  { %1406 = vmatpush1.bf16.msra.mxu1 %v1343_v51  ;;  %v1364_v57 = vld [vmem:[#allocation4 + $0xc8] sm:$0xff]  ;;  %v1363_v58 = vld [vmem:[#allocation4 + $0xc0] sm:$0xff]  ;;  %v1349_v28 = vld [vmem:[#allocation4 + $0x50] sm:$0xff] }
 0x641   :  { %1407 = vmatprep.subr.bf16.mxu1 %v1348_v52  ;;  %v1368_v5 = vld [vmem:[#allocation4 + $0xe8] sm:$0xff]  ;;  %v1367_v59 = vld [vmem:[#allocation4 + $0xe0] sm:$0xff]  ;;  %v1354_v30 = vld [vmem:[#allocation4 + $0x78] sm:$0xff] }
 0x642   :  { %v1372_v9 = vld [vmem:[#allocation4 + $0x108] sm:$0xff]  ;;  %v1371_v60 = vld [vmem:[#allocation4 + $0x100] sm:$0xff]  ;;  %v1353_v17 = vld [vmem:[#allocation4 + $0x70] sm:$0xff] }
 0x643   :  { %v1376_v61 = vld [vmem:[#allocation4 + $0x128] sm:$0xff]  ;;  %v1375_v0 = vld [vmem:[#allocation4 + $0x120] sm:$0xff]  ;;  %v1358_v31 = vld [vmem:[#allocation4 + $0x98] sm:$0xff] }
 0x644   :  { %1408 = vmatpush1.bf16.msra.mxu1 %v1347_v53  ;;  %v1380_v4 = vld [vmem:[#allocation4 + $0x148] sm:$0xff]  ;;  %v1379_v1 = vld [vmem:[#allocation4 + $0x140] sm:$0xff]  ;;  %v1357_v32 = vld [vmem:[#allocation4 + $0x90] sm:$0xff] }
 0x645   :  { %1409 = vmatprep.subr.bf16.mxu1 %v1352_v54  ;;  %v1384_v2 = vld [vmem:[#allocation4 + $0x168] sm:$0xff]  ;;  %v1383_v10 = vld [vmem:[#allocation4 + $0x160] sm:$0xff]  ;;  %v1362_v33 = vld [vmem:[#allocation4 + $0xb8] sm:$0xff] }
 0x646   :  { %v1388_v3 = vld [vmem:[#allocation4 + $0x188] sm:$0xff]  ;;  %v1387_v6 = vld [vmem:[#allocation4 + $0x180] sm:$0xff]  ;;  %v1361_v34 = vld [vmem:[#allocation4 + $0xb0] sm:$0xff] }
 0x647   :  { %v1392_v7 = vld [vmem:[#allocation4 + $0x1a8] sm:$0xff]  ;;  %v1391_v12 = vld [vmem:[#allocation4 + $0x1a0] sm:$0xff]  ;;  %v1366_v35 = vld [vmem:[#allocation4 + $0xd8] sm:$0xff] }
 0x648   :  { %1410 = vmatpush1.bf16.msra.mxu1 %v1351_v55  ;;  %v1396_v14 = vld [vmem:[#allocation4 + $0x1c8] sm:$0xff]  ;;  %v1395_v15 = vld [vmem:[#allocation4 + $0x1c0] sm:$0xff]  ;;  %v1365_v36 = vld [vmem:[#allocation4 + $0xd0] sm:$0xff] }
 0x649   :  { %1411 = vmatprep.subr.bf16.mxu1 %v1356_v25  ;;  %v1400_v18 = vld [vmem:[#allocation4 + $0x1e8] sm:$0xff]  ;;  %v1399_v20 = vld [vmem:[#allocation4 + $0x1e0] sm:$0xff]  ;;  %v1370_v37 = vld [vmem:[#allocation4 + $0xf8] sm:$0xff] }
 0x64a   :  { %v1369_v38 = vld [vmem:[#allocation4 + $0xf0] sm:$0xff]  ;;  %v1374_v39 = vld [vmem:[#allocation4 + $0x118] sm:$0xff]  ;;  %v1513_v25 = vld [vmem:[#allocation5 + $0x8] sm:$0xff] }
 0x64b   :  { %v1373_v40 = vld [vmem:[#allocation4 + $0x110] sm:$0xff]  ;;  %v1378_v41 = vld [vmem:[#allocation4 + $0x138] sm:$0xff] }
 0x64c   :  { %1412 = vmatpush1.bf16.msra.mxu1 %v1355_v19  ;;  %v1377_v42 = vld [vmem:[#allocation4 + $0x130] sm:$0xff]  ;;  %v1382_v45 = vld [vmem:[#allocation4 + $0x158] sm:$0xff]  ;;  %v2859_v19 = vpack.c.bf16 %v2843_v46, %v2843_v46  ;;  %v1529_v46 = vld [vmem:[#allocation5 + $0x88] sm:$0xff] }
 0x64d   :  { %1413 = vmatprep.subr.bf16.mxu1 %v1360_v29  ;;  %v1381_v47 = vld [vmem:[#allocation4 + $0x150] sm:$0xff]  ;;  %v1386_v8 = vld [vmem:[#allocation4 + $0x178] sm:$0xff]  ;;  %v1512_v29 = vld [vmem:[#allocation5] sm:$0xff] }
 0x64e   :  { %v1390_v48 = vld [vmem:[#allocation4 + $0x198] sm:$0xff]  ;;  %v1389_v49 = vld [vmem:[#allocation4 + $0x190] sm:$0xff] }
 0x64f   :  { %v1394_v50 = vld [vmem:[#allocation4 + $0x1b8] sm:$0xff]  ;;  %v1393_v51 = vld [vmem:[#allocation4 + $0x1b0] sm:$0xff] }
 0x650   :  { %1414 = vmatpush1.bf16.msra.mxu1 %v1359_v56  ;;  %v1398_v52 = vld [vmem:[#allocation4 + $0x1d8] sm:$0xff]  ;;  %v1397_v53 = vld [vmem:[#allocation4 + $0x1d0] sm:$0xff]  ;;  %v1517_v56 = vld [vmem:[#allocation5 + $0x28] sm:$0xff] }
 0x651   :  { %1415 = vmatprep.subr.bf16.mxu1 %v1364_v57  ;;  %v1402_v54 = vld [vmem:[#allocation4 + $0x1f8] sm:$0xff]  ;;  %v1401_v55 = vld [vmem:[#allocation4 + $0x1f0] sm:$0xff]  ;;  %v1516_v57 = vld [vmem:[#allocation5 + $0x20] sm:$0xff] }
 0x654   :  { %1416 = vmatpush1.bf16.msra.mxu1 %v1363_v58  ;;  %v1521_v58 = vld [vmem:[#allocation5 + $0x48] sm:$0xff] }
 0x655   :  { %1417 = vmatprep.subr.bf16.mxu1 %v1368_v5  ;;  %v1520_v5 = vld [vmem:[#allocation5 + $0x40] sm:$0xff] }
 0x658   :  { %1418 = vmatpush1.bf16.msra.mxu1 %v1367_v59  ;;  %v1525_v59 = vld [vmem:[#allocation5 + $0x68] sm:$0xff] }
 0x659   :  { %1419 = vmatprep.subr.bf16.mxu1 %v1372_v9  ;;  %v1524_v9 = vld [vmem:[#allocation5 + $0x60] sm:$0xff] }
 0x65c   :  { %1420 = vmatpush1.bf16.msra.mxu1 %v1371_v60  ;;  %v1528_v60 = vld [vmem:[#allocation5 + $0x80] sm:$0xff] }
 0x65d   :  { %1421 = vmatprep.subr.bf16.mxu1 %v1376_v61  ;;  %v1533_v61 = vld [vmem:[#allocation5 + $0xa8] sm:$0xff] }
 0x660   :  { %1422 = vmatpush1.bf16.msra.mxu1 %v1375_v0  ;;  %v1532_v0 = vld [vmem:[#allocation5 + $0xa0] sm:$0xff] }
 0x661   :  { %1423 = vmatprep.subr.bf16.mxu1 %v1380_v4  ;;  %v1537_v4 = vld [vmem:[#allocation5 + $0xc8] sm:$0xff] }
 0x664   :  { %1424 = vmatpush1.bf16.msra.mxu1 %v1379_v1  ;;  %v1536_v1 = vld [vmem:[#allocation5 + $0xc0] sm:$0xff] }
 0x665   :  { %1425 = vmatprep.subr.bf16.mxu1 %v1384_v2  ;;  %v1541_v2 = vld [vmem:[#allocation5 + $0xe8] sm:$0xff] }
 0x668   :  { %1426 = vmatpush1.bf16.msra.mxu1 %v1383_v10  ;;  %v1540_v10 = vld [vmem:[#allocation5 + $0xe0] sm:$0xff] }
 0x669   :  { %1427 = vmatprep.subr.bf16.mxu1 %v1388_v3  ;;  %v1545_v3 = vld [vmem:[#allocation5 + $0x108] sm:$0xff] }
 0x66c   :  { %1428 = vmatpush1.bf16.msra.mxu1 %v1387_v6  ;;  %v1544_v6 = vld [vmem:[#allocation5 + $0x100] sm:$0xff] }
 0x66d   :  { %1429 = vmatprep.subr.bf16.mxu1 %v1392_v7  ;;  %v1549_v7 = vld [vmem:[#allocation5 + $0x128] sm:$0xff] }
 0x670   :  { %1430 = vmatpush1.bf16.msra.mxu1 %v1391_v12  ;;  %v1548_v12 = vld [vmem:[#allocation5 + $0x120] sm:$0xff] }
 0x671   :  { %1431 = vmatprep.subr.bf16.mxu1 %v1396_v14  ;;  %v1553_v14 = vld [vmem:[#allocation5 + $0x148] sm:$0xff] }
 0x674   :  { %1432 = vmatpush1.bf16.msra.mxu1 %v1395_v15  ;;  %v1552_v15 = vld [vmem:[#allocation5 + $0x140] sm:$0xff] }
 0x675   :  { %1433 = vmatprep.subr.bf16.mxu1 %v1400_v18  ;;  %v1557_v18 = vld [vmem:[#allocation5 + $0x168] sm:$0xff] }
 0x678   :  { %1434 = vmatpush1.bf16.msra.mxu1 %v1399_v20  ;;  %v1556_v20 = vld [vmem:[#allocation5 + $0x160] sm:$0xff] }
 0x679   :  { %1444 = vmatprep.subr.bf16.mxu1 %v1342_v21  ;;  %v1561_v21 = vld [vmem:[#allocation5 + $0x188] sm:$0xff] }
 0x67b   :  { %1436 = vmatmul.mubr.bf16.vlgmr.msra.gmra.mrb[12].mxu1 %v2853_v22 }
 0x67c   :  { %1445 = vmatpush1.bf16.msra.mxu1 %v1341_v23  ;;  %1476 = vmatprep.mubr.bf16.mxu1 %v2847_v16  ;;  %v1385_v16 = vld [vmem:[#allocation4 + $0x170] sm:$0xff]  ;;  %v1565_v23 = vld [vmem:[#allocation5 + $0x1a8] sm:$0xff] }
 0x67d   :  { %1446 = vmatprep.subr.bf16.mxu1 %v1346_v24  ;;  %v1564_v24 = vld [vmem:[#allocation5 + $0x1a0] sm:$0xff] }
 0x680   :  { %1447 = vmatpush1.bf16.msra.mxu1 %v1345_v26  ;;  %v1569_v26 = vld [vmem:[#allocation5 + $0x1c8] sm:$0xff] }
 0x681   :  { %1448 = vmatprep.subr.bf16.mxu1 %v1350_v27  ;;  %v1568_v27 = vld [vmem:[#allocation5 + $0x1c0] sm:$0xff] }
 0x684   :  { %1449 = vmatpush1.bf16.msra.mxu1 %v1349_v28  ;;  %v1573_v28 = vld [vmem:[#allocation5 + $0x1e8] sm:$0xff] }
 0x685   :  { %1450 = vmatprep.subr.bf16.mxu1 %v1354_v30  ;;  %v1572_v30 = vld [vmem:[#allocation5 + $0x1e0] sm:$0xff] }
 0x688   :  { %1451 = vmatpush1.bf16.msra.mxu1 %v1353_v17  ;;  %v1515_v17 = vld [vmem:[#allocation5 + $0x18] sm:$0xff] }
 0x689   :  { %1452 = vmatprep.subr.bf16.mxu1 %v1358_v31  ;;  %v2865_v31 = vpack.c.bf16 %v2841_v44, %v2841_v44  ;;  %v1526_v44 = vld [vmem:[#allocation5 + $0x70] sm:$0xff] }
 0x68c   :  { %1453 = vmatpush1.bf16.msra.mxu1 %v1357_v32  ;;  %v1514_v32 = vld [vmem:[#allocation5 + $0x10] sm:$0xff] }
 0x68d   :  { %1454 = vmatprep.subr.bf16.mxu1 %v1362_v33  ;;  %v1519_v33 = vld [vmem:[#allocation5 + $0x38] sm:$0xff] }
 0x690   :  { %1455 = vmatpush1.bf16.msra.mxu1 %v1361_v34  ;;  %v1518_v34 = vld [vmem:[#allocation5 + $0x30] sm:$0xff] }
 0x691   :  { %1456 = vmatprep.subr.bf16.mxu1 %v1366_v35  ;;  %v1523_v35 = vld [vmem:[#allocation5 + $0x58] sm:$0xff] }
 0x694   :  { %1457 = vmatpush1.bf16.msra.mxu1 %v1365_v36  ;;  %v1522_v36 = vld [vmem:[#allocation5 + $0x50] sm:$0xff] }
 0x695   :  { %1458 = vmatprep.subr.bf16.mxu1 %v1370_v37  ;;  %v1527_v37 = vld [vmem:[#allocation5 + $0x78] sm:$0xff] }
 0x698   :  { %1459 = vmatpush1.bf16.msra.mxu1 %v1369_v38  ;;  %v1531_v38 = vld [vmem:[#allocation5 + $0x98] sm:$0xff] }
 0x699   :  { %1460 = vmatprep.subr.bf16.mxu1 %v1374_v39  ;;  %v1530_v39 = vld [vmem:[#allocation5 + $0x90] sm:$0xff] }
 0x69c   :  { %1461 = vmatpush1.bf16.msra.mxu1 %v1373_v40  ;;  %v1535_v40 = vld [vmem:[#allocation5 + $0xb8] sm:$0xff] }
 0x69d   :  { %1462 = vmatprep.subr.bf16.mxu1 %v1378_v41  ;;  %v1534_v41 = vld [vmem:[#allocation5 + $0xb0] sm:$0xff] }
 0x6a0   :  { %1463 = vmatpush1.bf16.msra.mxu1 %v1377_v42  ;;  %v1539_v42 = vld [vmem:[#allocation5 + $0xd8] sm:$0xff] }
 0x6a1   :  { %1464 = vmatprep.subr.bf16.mxu1 %v1382_v45  ;;  %v1538_v45 = vld [vmem:[#allocation5 + $0xd0] sm:$0xff] }
 0x6a4   :  { %1465 = vmatpush1.bf16.msra.mxu1 %v1381_v47  ;;  %v1543_v47 = vld [vmem:[#allocation5 + $0xf8] sm:$0xff] }
 0x6a5   :  { %1466 = vmatprep.subr.bf16.mxu1 %v1386_v8  ;;  %v1542_v8 = vld [vmem:[#allocation5 + $0xf0] sm:$0xff] }
 0x6a8   :  { %1467 = vmatpush1.bf16.msra.mxu1 %v1385_v16  ;;  %v1547_v16 = vld [vmem:[#allocation5 + $0x118] sm:$0xff] }
 0x6a9   :  { %1468 = vmatprep.subr.bf16.mxu1 %v1390_v48  ;;  %v1546_v48 = vld [vmem:[#allocation5 + $0x110] sm:$0xff] }
 0x6ac   :  { %1469 = vmatpush1.bf16.msra.mxu1 %v1389_v49  ;;  %v1551_v49 = vld [vmem:[#allocation5 + $0x138] sm:$0xff] }
 0x6ad   :  { %1470 = vmatprep.subr.bf16.mxu1 %v1394_v50  ;;  %v1550_v50 = vld [vmem:[#allocation5 + $0x130] sm:$0xff] }
 0x6b0   :  { %1471 = vmatpush1.bf16.msra.mxu1 %v1393_v51  ;;  %v1555_v51 = vld [vmem:[#allocation5 + $0x158] sm:$0xff] }
 0x6b1   :  { %1472 = vmatprep.subr.bf16.mxu1 %v1398_v52  ;;  %v1554_v52 = vld [vmem:[#allocation5 + $0x150] sm:$0xff] }
 0x6b4   :  { %1473 = vmatpush1.bf16.msra.mxu1 %v1397_v53  ;;  %v1559_v53 = vld [vmem:[#allocation5 + $0x178] sm:$0xff] }
 0x6b5   :  { %1474 = vmatprep.subr.bf16.mxu1 %v1402_v54  ;;  %v1558_v54 = vld [vmem:[#allocation5 + $0x170] sm:$0xff] }
 0x6b8   :  { %1475 = vmatpush1.bf16.msra.mxu1 %v1401_v55  ;;  %v1563_v55 = vld [vmem:[#allocation5 + $0x198] sm:$0xff] }
 0x6b9   :  { %1576 = vmatprep.subr.bf16.mxu1 %v1513_v25  ;;  %v1562_v25 = vld [vmem:[#allocation5 + $0x190] sm:$0xff] }
 0x6bb   :  { %1477 = vmatmul.mubr.bf16.vlgmr.msra.gmra.mrb[16].mxu1 %v2853_v22  ;;  %v1560_v22 = vld [vmem:[#allocation5 + $0x180] sm:$0xff] }
 0x6bc   :  { %1577 = vmatpush1.bf16.msra.mxu1 %v1512_v29  ;;  %1608 = vmatprep.mubr.bf16.mxu1 %v2859_v19  ;;  %v1566_v29 = vld [vmem:[#allocation5 + $0x1b0] sm:$0xff] }
 0x6bd   :  { %1578 = vmatprep.subr.bf16.mxu1 %v1517_v56  ;;  %v1571_v56 = vld [vmem:[#allocation5 + $0x1d8] sm:$0xff] }
 0x6c0   :  { %1579 = vmatpush1.bf16.msra.mxu1 %v1516_v57  ;;  %v1570_v57 = vld [vmem:[#allocation5 + $0x1d0] sm:$0xff] }
 0x6c1   :  { %1580 = vmatprep.subr.bf16.mxu1 %v1521_v58  ;;  %v1575_v58 = vld [vmem:[#allocation5 + $0x1f8] sm:$0xff] }
 0x6c4   :  { %1581 = vmatpush1.bf16.msra.mxu1 %v1520_v5  ;;  %v1574_v5 = vld [vmem:[#allocation5 + $0x1f0] sm:$0xff] }
 0x6c5   :  { %1582 = vmatprep.subr.bf16.mxu1 %v1525_v59  ;;  %v2255_v59 = vld [vmem:[%s2934_s12 + $0x4] ss:$16 sps:$4 sm:$0xff]  }
 0x6c8   :  { %1583 = vmatpush1.bf16.msra.mxu1 %v1524_v9  ;;  %v2253_v9 = vld [vmem:[%s2934_s12] ss:$16 sps:$4 sm:$0xff]  }
 0x6c9   :  { %1584 = vmatprep.subr.bf16.mxu1 %v1529_v46  ;;  %v2258_v46 = vld [vmem:[%s2934_s12 + $0xc] ss:$16 sps:$4 sm:$0xff]  }
 0x6cc   :  { %1585 = vmatpush1.bf16.msra.mxu1 %v1528_v60  ;;  %v1668_v60 = vpop.permute.xlu0 %1667 }
 0x6cd   :  { %1586 = vmatprep.subr.bf16.mxu1 %v1533_v61  ;;  %v2256_v61 = vld [vmem:[%s2934_s12 + $0x8] ss:$16 sps:$4 sm:$0xff]  }
 0x6d0   :  { %1587 = vmatpush1.bf16.msra.mxu1 %v1532_v0  ;;  %v1336_v0 = vld [vmem:[%s2935_s13] sm:$0xf] }
 0x6d1   :  { %1588 = vmatprep.subr.bf16.mxu1 %v1537_v4  ;;  %v1489_v4 = vrot.slane %v1336_v0, %v2784_v11 }
 0x6d4   :  { %1589 = vmatpush1.bf16.msra.mxu1 %v1536_v1  ;;  %v1493_v1 = vrot.slane %v1336_v0, %v2789_v13 }
 0x6d5   :  { %1590 = vmatprep.subr.bf16.mxu1 %v1541_v2 }
 0x6d8   :  { %1591 = vmatpush1.bf16.msra.mxu1 %v1540_v10 }
 0x6d9   :  { %1592 = vmatprep.subr.bf16.mxu1 %v1545_v3 }
 0x6dc   :  { %1593 = vmatpush1.bf16.msra.mxu1 %v1544_v6 }
 0x6dd   :  { %1594 = vmatprep.subr.bf16.mxu1 %v1549_v7 }
 0x6e0   :  { %1595 = vmatpush1.bf16.msra.mxu1 %v1548_v12 }
 0x6e1   :  { %1596 = vmatprep.subr.bf16.mxu1 %v1553_v14 }
 0x6e4   :  { %1597 = vmatpush1.bf16.msra.mxu1 %v1552_v15 }
 0x6e5   :  { %1598 = vmatprep.subr.bf16.mxu1 %v1557_v18  ;;  %v1501_v18 = vrot.slane %v1336_v0, %v2774_v63 }
 0x6e8   :  { %1599 = vmatpush1.bf16.msra.mxu1 %v1556_v20 }
 0x6e9   :  { %1600 = vmatprep.subr.bf16.mxu1 %v1561_v21 }
 0x6ec   :  { %1601 = vmatpush1.bf16.msra.mxu1 %v1560_v22 }
 0x6ed   :  { %1602 = vmatprep.subr.bf16.mxu1 %v1565_v23 }
 0x6f0   :  { %1603 = vmatpush1.bf16.msra.mxu1 %v1564_v24 }
 0x6f1   :  { %1604 = vmatprep.subr.bf16.mxu1 %v1569_v26 }
 0x6f4   :  { %1605 = vmatpush1.bf16.msra.mxu1 %v1568_v27 }
 0x6f5   :  { %1606 = vmatprep.subr.bf16.mxu1 %v1573_v28 }
 0x6f8   :  { %1607 = vmatpush1.bf16.msra.mxu1 %v1572_v30 }
 0x6f9   :  { %1617 = vmatprep.subr.bf16.mxu1 %v1515_v17 }
 0x6fb   :  { %1609 = vmatmul.mubr.bf16.vlgmr.msra.gmra.mrb[12].mxu1 %v2865_v31 }
 0x6fc   :  { %1618 = vmatpush1.bf16.msra.mxu1 %v1514_v32  ;;  %1649 = vmatprep.mubr.bf16.mxu1 %v2859_v19  ;;  %v1567_v19 = vld [vmem:[#allocation5 + $0x1b8] sm:$0xff] }
 0x6fd   :  { %1619 = vmatprep.subr.bf16.mxu1 %v1519_v33 }
 0x700   :  { %1620 = vmatpush1.bf16.msra.mxu1 %v1518_v34 }
 0x701   :  { %1621 = vmatprep.subr.bf16.mxu1 %v1523_v35 }
 0x704   :  { %1622 = vmatpush1.bf16.msra.mxu1 %v1522_v36 }
 0x705   :  { %1623 = vmatprep.subr.bf16.mxu1 %v1527_v37 }
 0x708   :  { %1624 = vmatpush1.bf16.msra.mxu1 %v1526_v44 }
 0x709   :  { %1625 = vmatprep.subr.bf16.mxu1 %v1531_v38 }
 0x70c   :  { %1626 = vmatpush1.bf16.msra.mxu1 %v1530_v39 }
 0x70d   :  { %1627 = vmatprep.subr.bf16.mxu1 %v1535_v40 }
 0x710   :  { %1628 = vmatpush1.bf16.msra.mxu1 %v1534_v41 }
 0x711   :  { %1629 = vmatprep.subr.bf16.mxu1 %v1539_v42 }
 0x714   :  { %1630 = vmatpush1.bf16.msra.mxu1 %v1538_v45 }
 0x715   :  { %1631 = vmatprep.subr.bf16.mxu1 %v1543_v47 }
 0x718   :  { %1632 = vmatpush1.bf16.msra.mxu1 %v1542_v8 }
 0x719   :  { %1633 = vmatprep.subr.bf16.mxu1 %v1547_v16 }
 0x71c   :  { %1634 = vmatpush1.bf16.msra.mxu1 %v1546_v48 }
 0x71d   :  { %1635 = vmatprep.subr.bf16.mxu1 %v1551_v49 }
 0x720   :  { %1636 = vmatpush1.bf16.msra.mxu1 %v1550_v50 }
 0x721   :  { %1637 = vmatprep.subr.bf16.mxu1 %v1555_v51 }
 0x724   :  { %1638 = vmatpush1.bf16.msra.mxu1 %v1554_v52 }
 0x725   :  { %1639 = vmatprep.subr.bf16.mxu1 %v1559_v53 }
 0x728   :  { %1640 = vmatpush1.bf16.msra.mxu1 %v1558_v54 }
 0x729   :  { %1641 = vmatprep.subr.bf16.mxu1 %v1563_v55 }
 0x72c   :  { %1642 = vmatpush1.bf16.msra.mxu1 %v1562_v25 }
 0x72d   :  { %1643 = vmatprep.subr.bf16.mxu1 %v1567_v19 }
 0x730   :  { %1644 = vmatpush1.bf16.msra.mxu1 %v1566_v29 }
 0x731   :  { %1645 = vmatprep.subr.bf16.mxu1 %v1571_v56 }
 0x734   :  { %1646 = vmatpush1.bf16.msra.mxu1 %v1570_v57 }
 0x735   :  { %1647 = vmatprep.subr.bf16.mxu1 %v1575_v58 }
 0x738   :  { %1648 = vmatpush1.bf16.msra.mxu1 %v1574_v5 }
 0x739   :  { %1693 = vmatprep.subr.bf16.mxu1 %v2255_v59 }
 0x73b   :  { %1650 = vmatmul.mubr.bf16.vlgmr.msra.gmra.mrb[16].mxu1 %v2865_v31 }
 0x73c   :  { %1694 = vmatpush1.bf16.msra.mxu1 %v2253_v9  ;;  %1725 = vmatprep.mubr.bf16.mxu1 %v2463_v43 }
 0x73d   :  { %1734 = vmatprep.subr.bf16.mxu1 %v2258_v46 }
 0x743   :  { %2073 = vmatmul.mubr.msk.bf16.vlgmr.msra.gmra.mrb[12].mxu1 %vm1689_vm3, %v1668_v60 }
 0x744   :  { %1735 = vmatpush1.bf16.msra.mxu1 %v2256_v61  ;;  %1766 = vmatprep.mubr.bf16.mxu1 %v2463_v43  ;;  %v1497_v43 = vrot.slane %v1336_v0, %v2772_v62 }
 0x74b   :  { %2074 = vmatmul.mubr.msk.bf16.vlgmr.msra.gmra.mrb[16].mxu1 %vm1689_vm3, %v1668_v60 }
 0x816   :  { %v1727_v2 = vpop.f32.mrb[12].mxu1 }
 0x817   :  { %v2889_v10 = vadd.f32 %v1727_v2, %v1489_v4  ;;  %v1729_v3 = vpop.f32.mrb[13].mxu1 }
 0x818   :  { %v2134_v6 = vadd.f32 %v1729_v3, %v1493_v1  ;;  %v1731_v7 = vpop.f32.mrb[14].mxu1 }
 0x819   :  { %v1779_v12 = vmax.f32 %v2889_v10, 0.0  ;;  %v1732_v14 = vpop.f32.mrb[15].mxu1 }
 0x81a   :  { %v1780_v15 = vmax.f32 %v2134_v6, 0.0 }
 0x81e   :  { %v1768_v20 = vpop.f32.mrb[16].mxu1 }
 0x81f   :  { %v2894_v21 = vadd.f32 %v1768_v20, %v1497_v43  ;;  %v1770_v22 = vpop.f32.mrb[17].mxu1 }
 0x820   :  { %v2896_v23 = vadd.f32 %v1770_v22, %v1501_v18  ;;  %v1772_v24 = vpop.f32.mrb[18].mxu1 }
 0x821   :  { %v1781_v26 = vmax.f32 %v2894_v21, 0.0  ;;  %v1773_v27 = vpop.f32.mrb[19].mxu1 }
 0x822   :  { %v1782_v28 = vmax.f32 %v2896_v23, 0.0 }
 0x823   :  { %2429 = dma.done.wait [#allocation7 + $0x4], 8192 }
 0x824   :  { %2430 = vsyncadd [#allocation7 + $0x4], 4294959104  ;;  %v1786_v30 = vpack.c.bf16 %v1780_v15, %v1780_v15  ;;  %v1790_v17 = vld [vmem:[#allocation6 + $0x8] sm:$0xff]  ;;  %v1789_v62 = vld [vmem:[#allocation6] sm:$0xff]  ;;  %v1785_v58 = vpack.c.bf16 %v1779_v12, %v1779_v12  ;;  %v1788_v5 = vpack.c.bf16 %v1782_v28, %v1782_v28  ;;  %s2976_s20 = sld [smem:[#allocation46_spill]]  ;;  %vm1974_vm4 = vcmask 7168  }
 0x825   :  { %v1792_v31 = vld [vmem:[#allocation6 + $0x18] sm:$0xff]  ;;  %1865 = vmatprep.subr.bf16.mxu0 %v1790_v17  ;;  %v1791_v63 = vld [vmem:[#allocation6 + $0x10] sm:$0xff]  ;;  %v1794_v32 = vld [vmem:[#allocation6 + $0x28] sm:$0xff]  ;;  %s2977_s0 = sld [smem:[#allocation47_spill]] }
 0x826   :  { %1897 = vmatprep.mubr.bf16.mxu0 %v1786_v30  ;;  %1866 = vmatpush1.bf16.msra.mxu0 %v1789_v62  ;;  %v1793_v33 = vld [vmem:[#allocation6 + $0x20] sm:$0xff]  ;;  %v1796_v34 = vld [vmem:[#allocation6 + $0x38] sm:$0xff]  ;;  %v1795_v35 = vld [vmem:[#allocation6 + $0x30] sm:$0xff] }
 0x827   :  { %1867 = vmatprep.subr.bf16.mxu0 %v1792_v31  ;;  %v1798_v36 = vld [vmem:[#allocation6 + $0x48] sm:$0xff]  ;;  %v1797_v37 = vld [vmem:[#allocation6 + $0x40] sm:$0xff]  ;;  %v1800_v44 = vld [vmem:[#allocation6 + $0x58] sm:$0xff] }
 0x828   :  { %v1799_v38 = vld [vmem:[#allocation6 + $0x50] sm:$0xff]  ;;  %v1802_v39 = vld [vmem:[#allocation6 + $0x68] sm:$0xff]  ;;  %v1801_v40 = vld [vmem:[#allocation6 + $0x60] sm:$0xff] }
 0x829   :  { %v1804_v41 = vld [vmem:[#allocation6 + $0x78] sm:$0xff]  ;;  %v1803_v42 = vld [vmem:[#allocation6 + $0x70] sm:$0xff]  ;;  %v1806_v45 = vld [vmem:[#allocation6 + $0x88] sm:$0xff] }
 0x82a   :  { %1868 = vmatpush1.bf16.msra.mxu0 %v1791_v63  ;;  %v1805_v47 = vld [vmem:[#allocation6 + $0x80] sm:$0xff]  ;;  %v1808_v8 = vld [vmem:[#allocation6 + $0x98] sm:$0xff]  ;;  %v1807_v16 = vld [vmem:[#allocation6 + $0x90] sm:$0xff] }
 0x82b   :  { %1869 = vmatprep.subr.bf16.mxu0 %v1794_v32  ;;  %v1810_v48 = vld [vmem:[#allocation6 + $0xa8] sm:$0xff]  ;;  %v1809_v49 = vld [vmem:[#allocation6 + $0xa0] sm:$0xff]  ;;  %v1812_v50 = vld [vmem:[#allocation6 + $0xb8] sm:$0xff] }
 0x82c   :  { %v1811_v51 = vld [vmem:[#allocation6 + $0xb0] sm:$0xff]  ;;  %v1814_v52 = vld [vmem:[#allocation6 + $0xc8] sm:$0xff]  ;;  %v1813_v53 = vld [vmem:[#allocation6 + $0xc0] sm:$0xff] }
 0x82d   :  { %v1816_v54 = vld [vmem:[#allocation6 + $0xd8] sm:$0xff]  ;;  %v1815_v55 = vld [vmem:[#allocation6 + $0xd0] sm:$0xff]  ;;  %v1818_v25 = vld [vmem:[#allocation6 + $0xe8] sm:$0xff] }
 0x82e   :  { %1870 = vmatpush1.bf16.msra.mxu0 %v1793_v33  ;;  %v1817_v19 = vld [vmem:[#allocation6 + $0xe0] sm:$0xff]  ;;  %v1820_v29 = vld [vmem:[#allocation6 + $0xf8] sm:$0xff]  ;;  %v1819_v56 = vld [vmem:[#allocation6 + $0xf0] sm:$0xff] }
 0x82f   :  { %1871 = vmatprep.subr.bf16.mxu0 %v1796_v34  ;;  %v1822_v57 = vld [vmem:[#allocation6 + $0x108] sm:$0xff]  ;;  %v1821_v59 = vld [vmem:[#allocation6 + $0x100] sm:$0xff]  ;;  %v1824_v9 = vld [vmem:[#allocation6 + $0x118] sm:$0xff]  ;;  %v1787_v34 = vpack.c.bf16 %v1781_v26, %v1781_v26 }
 0x830   :  { %v1823_v46 = vld [vmem:[#allocation6 + $0x110] sm:$0xff]  ;;  %v1826_v60 = vld [vmem:[#allocation6 + $0x128] sm:$0xff]  ;;  %v1825_v61 = vld [vmem:[#allocation6 + $0x120] sm:$0xff] }
 0x831   :  { %v1828_v0 = vld [vmem:[#allocation6 + $0x138] sm:$0xff]  ;;  %v1827_v4 = vld [vmem:[#allocation6 + $0x130] sm:$0xff]  ;;  %v1830_v1 = vld [vmem:[#allocation6 + $0x148] sm:$0xff] }
 0x832   :  { %1872 = vmatpush1.bf16.msra.mxu0 %v1795_v35  ;;  %v1829_v2 = vld [vmem:[#allocation6 + $0x140] sm:$0xff]  ;;  %v1832_v10 = vld [vmem:[#allocation6 + $0x158] sm:$0xff]  ;;  %v1831_v3 = vld [vmem:[#allocation6 + $0x150] sm:$0xff] }
 0x833   :  { %1873 = vmatprep.subr.bf16.mxu0 %v1798_v36  ;;  %v1834_v6 = vld [vmem:[#allocation6 + $0x168] sm:$0xff]  ;;  %v1833_v7 = vld [vmem:[#allocation6 + $0x160] sm:$0xff]  ;;  %v1836_v12 = vld [vmem:[#allocation6 + $0x178] sm:$0xff] }
 0x834   :  { %v1835_v14 = vld [vmem:[#allocation6 + $0x170] sm:$0xff]  ;;  %v1838_v15 = vld [vmem:[#allocation6 + $0x188] sm:$0xff]  ;;  %v1837_v43 = vld [vmem:[#allocation6 + $0x180] sm:$0xff] }
 0x835   :  { %v1840_v18 = vld [vmem:[#allocation6 + $0x198] sm:$0xff]  ;;  %v1839_v20 = vld [vmem:[#allocation6 + $0x190] sm:$0xff]  ;;  %v1842_v22 = vld [vmem:[#allocation6 + $0x1a8] sm:$0xff] }
 0x836   :  { %1874 = vmatpush1.bf16.msra.mxu0 %v1797_v37  ;;  %v1841_v23 = vld [vmem:[#allocation6 + $0x1a0] sm:$0xff]  ;;  %v1844_v24 = vld [vmem:[#allocation6 + $0x1b8] sm:$0xff]  ;;  %v1843_v27 = vld [vmem:[#allocation6 + $0x1b0] sm:$0xff] }
 0x837   :  { %1875 = vmatprep.subr.bf16.mxu0 %v1800_v44  ;;  %v1846_v28 = vld [vmem:[#allocation6 + $0x1c8] sm:$0xff]  ;;  %v1845_v30 = vld [vmem:[#allocation6 + $0x1c0] sm:$0xff]  ;;  %v1848_v17 = vld [vmem:[#allocation6 + $0x1d8] sm:$0xff] }
 0x838   :  { %v1847_v62 = vld [vmem:[#allocation6 + $0x1d0] sm:$0xff]  ;;  %v1850_v31 = vld [vmem:[#allocation6 + $0x1e8] sm:$0xff]  ;;  %v1849_v63 = vld [vmem:[#allocation6 + $0x1e0] sm:$0xff] }
 0x839   :  { %v1852_v32 = vld [vmem:[#allocation6 + $0x1f8] sm:$0xff]  ;;  %v1851_v33 = vld [vmem:[#allocation6 + $0x1f0] sm:$0xff]  ;;  %v1853_v35 = vld [vmem:[%s2936_s14] sm:$0x3] }
 0x83a   :  { %1876 = vmatpush1.bf16.msra.mxu0 %v1799_v38  ;;  %v1858_v36 = vrot.slane %v1853_v35, %v2784_v11  ;;  %v1862_v37 = vrot.slane %v1853_v35, %v2789_v13  ;;  %v1949_v44 = vld [vmem:[%s2976_s20] sm:$0x3] }
 0x83b   :  { %1877 = vmatprep.subr.bf16.mxu0 %v1802_v39  ;;  %v1954_v21 = vrot.slane %v1949_v44, %v2784_v11 }
 0x83e   :  { %1878 = vmatpush1.bf16.msra.mxu0 %v1801_v40 }
 0x83f   :  { %1879 = vmatprep.subr.bf16.mxu0 %v1804_v41 }
 0x842   :  { %1880 = vmatpush1.bf16.msra.mxu0 %v1803_v42  ;;  %v1958_v42 = vrot.slane %v1949_v44, %v2789_v13 }
 0x843   :  { %1881 = vmatprep.subr.bf16.mxu0 %v1806_v45 }
 0x846   :  { %1882 = vmatpush1.bf16.msra.mxu0 %v1805_v47 }
 0x847   :  { %1883 = vmatprep.subr.bf16.mxu0 %v1808_v8 }
 0x84a   :  { %1884 = vmatpush1.bf16.msra.mxu0 %v1807_v16 }
 0x84b   :  { %1885 = vmatprep.subr.bf16.mxu0 %v1810_v48 }
 0x84e   :  { %1886 = vmatpush1.bf16.msra.mxu0 %v1809_v49 }
 0x84f   :  { %1887 = vmatprep.subr.bf16.mxu0 %v1812_v50  ;;  %v2075_v50 = vld [vmem:[#allocation8] ss:$0 sm:$0xff] }
 0x852   :  { %1888 = vmatpush1.bf16.msra.mxu0 %v1811_v51 }
 0x853   :  { %1889 = vmatprep.subr.bf16.mxu0 %v1814_v52 }
 0x856   :  { %1890 = vmatpush1.bf16.msra.mxu0 %v1813_v53 }
 0x857   :  { %1891 = vmatprep.subr.bf16.mxu0 %v1816_v54 }
 0x85a   :  { %1892 = vmatpush1.bf16.msra.mxu0 %v1815_v55 }
 0x85b   :  { %1893 = vmatprep.subr.bf16.mxu0 %v1818_v25 }
 0x85e   :  { %1894 = vmatpush1.bf16.msra.mxu0 %v1817_v19 }
 0x85f   :  { %1895 = vmatprep.subr.bf16.mxu0 %v1820_v29 }
 0x862   :  { %1896 = vmatpush1.bf16.msra.mxu0 %v1819_v56 }
 0x863   :  { %1906 = vmatprep.subr.bf16.mxu0 %v1822_v57 }
 0x865   :  { %1898 = vmatmul.mubr.bf16.vlgmr.msra.gmra.mrb[20].mxu0 %v1785_v58 }
 0x866   :  { %1907 = vmatpush1.bf16.msra.mxu0 %v1821_v59  ;;  %1938 = vmatprep.mubr.bf16.mxu0 %v1788_v5 }
 0x867   :  { %1908 = vmatprep.subr.bf16.mxu0 %v1824_v9 }
 0x86a   :  { %1909 = vmatpush1.bf16.msra.mxu0 %v1823_v46 }
 0x86b   :  { %1910 = vmatprep.subr.bf16.mxu0 %v1826_v60 }
 0x86e   :  { %1911 = vmatpush1.bf16.msra.mxu0 %v1825_v61 }
 0x86f   :  { %1912 = vmatprep.subr.bf16.mxu0 %v1828_v0 }
 0x872   :  { %1913 = vmatpush1.bf16.msra.mxu0 %v1827_v4 }
 0x873   :  { %1914 = vmatprep.subr.bf16.mxu0 %v1830_v1 }
 0x876   :  { %1915 = vmatpush1.bf16.msra.mxu0 %v1829_v2 }
 0x877   :  { %1916 = vmatprep.subr.bf16.mxu0 %v1832_v10 }
 0x87a   :  { %1917 = vmatpush1.bf16.msra.mxu0 %v1831_v3 }
 0x87b   :  { %1918 = vmatprep.subr.bf16.mxu0 %v1834_v6 }
 0x87e   :  { %1919 = vmatpush1.bf16.msra.mxu0 %v1833_v7 }
 0x87f   :  { %1920 = vmatprep.subr.bf16.mxu0 %v1836_v12 }
 0x882   :  { %1921 = vmatpush1.bf16.msra.mxu0 %v1835_v14 }
 0x883   :  { %1922 = vmatprep.subr.bf16.mxu0 %v1838_v15 }
 0x886   :  { %1923 = vmatpush1.bf16.msra.mxu0 %v1837_v43 }
 0x887   :  { %1924 = vmatprep.subr.bf16.mxu0 %v1840_v18 }
 0x88a   :  { %1925 = vmatpush1.bf16.msra.mxu0 %v1839_v20 }
 0x88b   :  { %1926 = vmatprep.subr.bf16.mxu0 %v1842_v22 }
 0x88e   :  { %1927 = vmatpush1.bf16.msra.mxu0 %v1841_v23 }
 0x88f   :  { %1928 = vmatprep.subr.bf16.mxu0 %v1844_v24 }
 0x892   :  { %1929 = vmatpush1.bf16.msra.mxu0 %v1843_v27 }
 0x893   :  { %1930 = vmatprep.subr.bf16.mxu0 %v1846_v28 }
 0x896   :  { %1931 = vmatpush1.bf16.msra.mxu0 %v1845_v30 }
 0x897   :  { %1932 = vmatprep.subr.bf16.mxu0 %v1848_v17 }
 0x89a   :  { %1933 = vmatpush1.bf16.msra.mxu0 %v1847_v62 }
 0x89b   :  { %1934 = vmatprep.subr.bf16.mxu0 %v1850_v31 }
 0x89e   :  { %1935 = vmatpush1.bf16.msra.mxu0 %v1849_v63 }
 0x89f   :  { %1936 = vmatprep.subr.bf16.mxu0 %v1852_v32 }
 0x8a2   :  { %1937 = vmatpush1.bf16.msra.mxu0 %v1851_v33 }
 0x8a5   :  { %1939 = vmatmul.mubr.bf16.vlgmr.msra.gmra.mrb[20].mxu0 %v1787_v34 }
 0x978   :  { %v1940_v38 = vpop.f32.mrb[20].mxu0 }
 0x979   :  { %v2137_v39 = vadd.f32 %v1940_v38, %v1858_v36  ;;  %v1942_v40 = vpop.f32.mrb[21].mxu0 }
 0x97a   :  { %v2138_v26 = vadd.f32 %v1942_v40, %v1862_v37  ;;  %v1944_v41 = vpop.f32.mrb[22].mxu0 }
 0x97b   :  { %v1947_v45 = vmax.f32 %v2137_v39, 0.0  ;;  %v1945_v47 = vpop.f32.mrb[23].mxu0 }
 0x97c   :  { %v1948_v8 = vmax.f32 %v2138_v26, 0.0 }
 0x97d   :  { %v1961_v16 = vmul.f32 %v1954_v21, %v1947_v45 }
 0x97e   :  { %v1962_v48 = vmul.f32 %v1958_v42, %v1948_v8 }
 0x980   :  { %v1963_v49 = vadd.f32 %v1962_v48, %v1961_v16 }
 0x982   :  { %1964 = vadd.xlane.f32.xlu0 %v1963_v49 }
 0xa0f   :  { %v1965_v51 = vpop.xlane.xlu0 %1964 }
 0xa10   :  { %v1973_v52 = vadd.f32 %v2075_v50, %v1965_v51 }
 0xa12   :  { %1975 = vst.msk [vmem:[%s2977_s0] sm:$0xff] %vm1974_vm4, %v1973_v52 }
 0xa13   :  { %1980 = vsyncpa [#allocation10], 1 }
 0xa14   :  { %1981 = vsyncpa [#allocation12], 1 }
 0xa15   :  { %1982 = vsyncpa [#allocation15], 1 }
 0xa16   :  { %1983 = vsyncpa [#allocation18], 1 }
 0xa17   :  { %1984 = vsyncmov [#allocation7] }
 0xa1a   :  { %s1985_s2 = vpop.sfrf %1984 }
 0xa1b   :  { %p2076_p0 = scmp.ne.s32.totalorder %s1985_s2, 0 }
 0xa1d   :  { %1989 = shalt.err (%p2076_p0)  }
 0xa1e   :  { %1991 = vsyncmov [#allocation7 + $0x1] }
 0xa21   :  { %s1992_s21 = vpop.sfrf %1991 }
 0xa22   :  { %p2077_p1 = scmp.ne.s32.totalorder %s1992_s21, 0 }
 0xa24   :  { %1996 = shalt.err (%p2077_p1)  }
 0xa25   :  { %1998 = vsyncmov [#allocation7 + $0x2] }
 0xa28   :  { %s1999_s4 = vpop.sfrf %1998 }
 0xa29   :  { %p2078_p2 = scmp.ne.s32.totalorder %s1999_s4, 0 }
 0xa2b   :  { %2003 = shalt.err (%p2078_p2)  }
 0xa2c   :  { %2005 = vsyncmov [#allocation7 + $0x3] }
 0xa2f   :  { %s2006_s25 = vpop.sfrf %2005 }
 0xa30   :  { %p2079_p3 = scmp.ne.s32.totalorder %s2006_s25, 0 }
 0xa32   :  { %2010 = shalt.err (%p2079_p3)  }
 0xa33   :  { %2012 = vsyncmov [#allocation7 + $0x4] }
 0xa36   :  { %s2013_s30 = vpop.sfrf %2012 }
 0xa37   :  { %p2080_p4 = scmp.ne.s32.totalorder %s2013_s30, 0 }
 0xa39   :  { %2017 = shalt.err (%p2080_p4)  }

</bundles_post_ra>
